<compile_context>
chip_gen: v6e
topology: v6e:2x2x1
jax: 0.10.0
libtpu: 0.0.40
codegen_flags: <defaults>
</compile_context>

<pallas_src>
import functools

import jax
import jax.numpy as jnp
from jax import lax
from jax.experimental import pallas as pl
from jax.experimental.pallas import tpu as pltpu

LANE = 128  # pad feature dims (and the node dim) to the vreg lane width


def _round_up(x, m):
    return (x + m - 1) // m * m


def _vmem_limit_bytes():
    """Generation-aware VMEM limit: ~85% of physical (v5e/v6e 128MiB, v7x 64MiB)."""
    try:
        cap = pltpu.get_tpu_info().vmem_capacity_bytes
    except Exception:
        cap = 64 * 1024 * 1024
    return max(32 * 1024 * 1024, int(0.85 * cap))


# ----------------------------------------------------------------------------
# Fused kernel: one grid step == one GraphSAGE layer
# ----------------------------------------------------------------------------
def _fused_encoder_kernel(a_ref, x_ref, dinv_ref, w_ref, pgb_ref,
                          o_ref, act_ref, *,
                          num_layers: int, dpad: int, n_valid: int, n_pad: int):
    layer = pl.program_id(0)

    # Layer 0: seed the VMEM-resident bf16 activation buffer with node features.
    @pl.when(layer == 0)
    def _():
        act_ref[...] = x_ref[...]

    x_b = act_ref[...]                                    # [Np, Dpad] bf16

    # Mean aggregation: exact integer-count A (bf16) @ x on the MXU, then an
    # f32 per-row 1/deg rescale on the VPU (hides under the N^2 matmul).
    agg = jnp.dot(a_ref[...], x_b, preferred_element_type=jnp.float32)
    agg = agg * dinv_ref[...]                             # [Np, 1] f32 broadcast

    # Merged SAGEConv projection as two K=Dpad dots on static ref slices
    # (lin_l on the aggregate, lin_r on the root) + bias. No concat copy.
    h = (jnp.dot(agg.astype(jnp.bfloat16), w_ref[0, :dpad, :],
                 preferred_element_type=jnp.float32)
         + jnp.dot(x_b, w_ref[0, dpad:, :],
                   preferred_element_type=jnp.float32)
         + pgb_ref[0, 0:1, :])                            # [Np, Dpad] f32

    # normalize=True -> F.normalize(h, p=2, dim=-1), eps=1e-12.
    sumsq = jnp.sum(h * h, axis=-1, keepdims=True)
    h = h * lax.rsqrt(jnp.maximum(sumsq, 1e-24))

    # Hidden layers: BatchNorm1d (training-mode batch stats over the VALID
    # rows only) + ReLU -> back into the resident bf16 activation.
    @pl.when(layer < num_layers - 1)
    def _():
        gamma = pgb_ref[0, 1:2, :]
        beta = pgb_ref[0, 2:3, :]
        if n_valid < n_pad:
            rows = lax.broadcasted_iota(jnp.int32, (n_pad, 1), 0)
            mask = (rows < n_valid).astype(jnp.float32)
            inv_n = jnp.float32(1.0 / n_valid)
            mean = jnp.sum(h * mask, axis=0, keepdims=True) * inv_n
            hc = (h - mean) * mask                        # reused for var + output
            var = jnp.sum(hc * hc, axis=0, keepdims=True) * inv_n
            hb = hc * lax.rsqrt(var + 1e-5) * gamma + beta
            act_ref[...] = (jnp.maximum(hb, 0.0) * mask).astype(act_ref.dtype)
        else:
            mean = jnp.mean(h, axis=0, keepdims=True)
            hc = h - mean
            var = jnp.mean(hc * hc, axis=0, keepdims=True)
            hb = hc * lax.rsqrt(var + 1e-5) * gamma + beta
            act_ref[...] = jnp.maximum(hb, 0.0).astype(act_ref.dtype)
        # TODO(synk): dropout is a no-op for p=0; BN running stats not tracked.

    # Final layer: emit the lane-dense, padded output (written back once).
    @pl.when(layer == num_layers - 1)
    def _():
        o_ref[...] = h.astype(o_ref.dtype)


# ----------------------------------------------------------------------------
# pallas_call builder + wrapper
# ----------------------------------------------------------------------------
def _resident_spec(shape, single_buffer):
    """Constant-index (layer-invariant) operand spec; single-buffered if possible."""
    if single_buffer:
        return pl.BlockSpec(shape, lambda l: (0, 0), pipeline_mode=pl.Buffered(1))
    return pl.BlockSpec(shape, lambda l: (0, 0))


def _make_encoder_call(n_pad, dpad, num_layers, n_valid, single_buffer_residents):
    kernel = functools.partial(_fused_encoder_kernel, num_layers=num_layers,
                               dpad=dpad, n_valid=n_valid, n_pad=n_pad)
    return pl.pallas_call(
        kernel,
        out_shape=jax.ShapeDtypeStruct((n_pad, dpad), jnp.float32),
        grid_spec=pltpu.PrefetchScalarGridSpec(
            num_scalar_prefetch=0,
            grid=(num_layers,),
            in_specs=[
                # Layer-invariant residents (DMA'd once, stay in VMEM):
                _resident_spec((n_pad, n_pad), single_buffer_residents),  # A counts (bf16)
                _resident_spec((n_pad, dpad), single_buffer_residents),   # x0 (bf16)
                _resident_spec((n_pad, 1), single_buffer_residents),      # 1/deg (f32)
                # Per-layer blocks (default double-buffered -> next layer prefetched):
                pl.BlockSpec((1, 2 * dpad, dpad), lambda l: (l, 0, 0)),   # [Wl; Wr] bf16
                pl.BlockSpec((1, 8, dpad), lambda l: (l, 0, 0)),          # bias/gamma/beta f32
            ],
            out_specs=pl.BlockSpec((n_pad, dpad), lambda l: (0, 0)),      # lane-dense output
            scratch_shapes=[pltpu.VMEM((n_pad, dpad), jnp.bfloat16)],     # resident activation
        ),
        compiler_params=pltpu.CompilerParams(
            dimension_semantics=("arbitrary",),        # layers are strictly sequential
            vmem_limit_bytes=_vmem_limit_bytes(),
        ),
    )


def sbm_graphsage_encoder(a_cnt, x_pad, inv_deg, w_stack, pgb_stack,
                          out_dim, n_valid):
    """Fused multi-layer GraphSAGE encoder as a single Pallas call."""
    n_pad, dpad = x_pad.shape
    num_layers = w_stack.shape[0]
    args = (a_cnt, x_pad, inv_deg, w_stack, pgb_stack)
    try:
        out_pad = _make_encoder_call(n_pad, dpad, num_layers, n_valid, True)(*args)
        out_pad = jax.block_until_ready(out_pad)
    except Exception:
        # Fallback for Pallas builds that reject Buffered(1) single-buffering.
        out_pad = _make_encoder_call(n_pad, dpad, num_layers, n_valid, False)(*args)
    return out_pad[:n_valid, :out_dim]


# ----------------------------------------------------------------------------
# Parameter construction + graph preprocessing (plain JAX glue)
# ----------------------------------------------------------------------------
def init_params(key, in_dim, out_dim, hidden_dim, layers, dpad=LANE):
    """Per-layer Wl/Wr/bl (+ BN gamma/beta), merged, zero-padded and stacked."""
    assert layers >= 2
    assert max(in_dim, hidden_dim, out_dim) <= dpad, (
        "feature dims must fit one 128-lane tile; derive dpad=ceil(max/128)*128")
    dims = [in_dim] + [hidden_dim] * (layers - 1) + [out_dim]
    w_stack, pgb_stack = [], []
    for li in range(layers):
        key, k1, k2, k3, k4, k5 = jax.random.split(key, 6)
        din, dout = dims[li], dims[li + 1]
        scale = 1.0 / jnp.sqrt(jnp.float32(din))
        wl = jax.random.uniform(k1, (din, dout), jnp.float32, -scale, scale)
        wr = jax.random.uniform(k2, (din, dout), jnp.float32, -scale, scale)
        bl = jax.random.uniform(k3, (dout,), jnp.float32, -scale, scale)
        if li < layers - 1:
            gamma = 1.0 + 0.1 * jax.random.normal(k4, (dout,), jnp.float32)
            beta = 0.1 * jax.random.normal(k5, (dout,), jnp.float32)
        else:                                   # unused for the final layer
            gamma = jnp.ones((dout,), jnp.float32)
            beta = jnp.zeros((dout,), jnp.float32)

        # merged projection [[Wl],[Wr]] zero-padded to [2*dpad, dpad]
        w = jnp.zeros((2 * dpad, dpad), jnp.float32)
        w = w.at[:din, :dout].set(wl)              # lin_l (aggregate) half
        w = w.at[dpad:dpad + din, :dout].set(wr)   # lin_r (root) half
        w_stack.append(w)

        # packed per-layer vectors: row 0 = bias, 1 = gamma, 2 = beta
        pgb = jnp.zeros((8, dpad), jnp.float32)
        pgb = pgb.at[0, :dout].set(bl)
        pgb = pgb.at[1, :dout].set(gamma)
        pgb = pgb.at[2, :dout].set(beta)
        pgb_stack.append(pgb)

    return (jnp.stack(w_stack).astype(jnp.bfloat16),   # [L, 2*dpad, dpad] bf16
            jnp.stack(pgb_stack))                      # [L, 8, dpad] f32


def build_graph_inputs(edge_index, num_nodes, n_pad):
    """Exact edge-count matrix (bf16, small ints) + f32 per-row 1/deg."""
    src, dst = edge_index[0], edge_index[1]
    a = jnp.zeros((n_pad, n_pad), jnp.float32).at[dst, src].add(1.0)
    deg = jnp.sum(a, axis=1, keepdims=True)
    inv_deg = 1.0 / jnp.maximum(deg, 1.0)              # zero rows stay zero
    return a.astype(jnp.bfloat16), inv_deg.astype(jnp.float32)


# ----------------------------------------------------------------------------
# Main
# ----------------------------------------------------------------------------
if __name__ == "__main__":
    key = jax.random.PRNGKey(0)

    num_nodes = 16
    in_dim, hidden_dim, out_dim, layers = 8, 32, 16, 3

    key, kx, ke = jax.random.split(key, 3)
    x = jax.random.normal(kx, (num_nodes, in_dim), jnp.float32)

    # lane-dense padding of the node dim (BN stats are masked to valid rows)
    n_pad = _round_up(num_nodes, LANE)
    x_pad = (jnp.zeros((n_pad, LANE), jnp.float32)
             .at[:num_nodes, :in_dim].set(x)).astype(jnp.bfloat16)

    # deterministic random graph: ring edges + a few random extra edges (both dirs)
    ring_src = jnp.arange(num_nodes, dtype=jnp.int32)
    ring_dst = (ring_src + 1) % num_nodes
    extra_src = jax.random.randint(ke, (8,), 0, num_nodes, dtype=jnp.int32)
    extra_dst = (extra_src + 5) % num_nodes
    src = jnp.concatenate([ring_src, ring_dst, extra_src, extra_dst])
    dst = jnp.concatenate([ring_dst, ring_src, extra_dst, extra_src])
    edge_index = jnp.stack([src, dst], axis=0)

    a_cnt, inv_deg = build_graph_inputs(edge_index, num_nodes, n_pad)
    w_stack, pgb_stack = init_params(key, in_dim, out_dim, hidden_dim, layers,
                                     dpad=LANE)

    out = sbm_graphsage_encoder(a_cnt, x_pad, inv_deg, w_stack, pgb_stack,
                                out_dim, num_nodes)
    out = jax.block_until_ready(out)
    assert out.shape == (num_nodes, out_dim)
    assert bool(jnp.all(jnp.isfinite(out)))
    print("KERNEL_OK")
</pallas_src>

<mosaic_0001>
module attributes {stable_mosaic.version = 11 : i64} {
  func.func @_fused_encoder_kernel(%arg0: i32, %arg1: memref<128x128xbf16, #tpu.memory_space<vmem>>, %arg2: memref<128x128xbf16, #tpu.memory_space<vmem>>, %arg3: memref<128x1xf32, #tpu.memory_space<vmem>>, %arg4: memref<1x256x128xbf16, #tpu.memory_space<vmem>>, %arg5: memref<1x8x128xf32, #tpu.memory_space<vmem>>, %arg6: memref<128x128xf32, #tpu.memory_space<vmem>>, %arg7: memref<128x128xbf16, #tpu.memory_space<vmem>>) attributes {dimension_semantics = [#tpu.dimension_semantics<arbitrary>], iteration_bounds = array<i64: 3>, scalar_prefetch = 0 : i64, scratch_operands = 1 : i64, tpu.core_type = #tpu.core_type<tc>, window_params = [{pipeline_mode = #tpu.pipeline_mode<synchronous>, transform_indices = @transform_0, window_bounds = array<i64: 128, 128>}, {pipeline_mode = #tpu.pipeline_mode<synchronous>, transform_indices = @transform_1, window_bounds = array<i64: 128, 128>}, {pipeline_mode = #tpu.pipeline_mode<synchronous>, transform_indices = @transform_2, window_bounds = array<i64: 128, 1>}, {transform_indices = @transform_3, window_bounds = array<i64: 1, 256, 128>}, {transform_indices = @transform_4, window_bounds = array<i64: 1, 8, 128>}, {pipeline_mode = #tpu.pipeline_mode<synchronous>, transform_indices = @transform_5, window_bounds = array<i64: 128, 128>}]} {
    %c0_i32 = arith.constant 0 : i32
    %0 = arith.cmpi eq, %arg0, %c0_i32 : i32
    %1 = arith.extui %0 : i1 to i32
    %c0_i32_0 = arith.constant 0 : i32
    %2 = arith.cmpi ne, %1, %c0_i32_0 : i32
    scf.if %2 {
      %c0_21 = arith.constant 0 : index
      %c0_22 = arith.constant 0 : index
      %35 = vector.load %arg2[%c0_21, %c0_22] : memref<128x128xbf16, #tpu.memory_space<vmem>>, vector<128x128xbf16>
      %c0_23 = arith.constant 0 : index
      %c0_24 = arith.constant 0 : index
      %36 = vector.load %arg7[%c0_23, %c0_24] : memref<128x128xbf16, #tpu.memory_space<vmem>>, vector<128x128xbf16>
      tpu.vector_store %arg7[%c0_23, %c0_24], %35 {strides = array<i32>} : memref<128x128xbf16, #tpu.memory_space<vmem>>, vector<128x128xbf16>,
    } else {
    }
    %c0 = arith.constant 0 : index
    %c0_1 = arith.constant 0 : index
    %3 = vector.load %arg7[%c0, %c0_1] : memref<128x128xbf16, #tpu.memory_space<vmem>>, vector<128x128xbf16>
    %c0_2 = arith.constant 0 : index
    %c0_3 = arith.constant 0 : index
    %4 = vector.load %arg1[%c0_2, %c0_3] : memref<128x128xbf16, #tpu.memory_space<vmem>>, vector<128x128xbf16>
    %cst = arith.constant dense<0.000000e+00> : vector<128x128xf32>
    %5 = tpu.matmul %4, %3, %cst {dimension_numbers = #tpu.dot_dimension_numbers<[1], [0], [0], [1], [0, 0, 1, 1], [], []>} : vector<128x128xbf16>, vector<128x128xbf16>, vector<128x128xf32> -> vector<128x128xf32>
    %c0_4 = arith.constant 0 : index
    %c0_5 = arith.constant 0 : index
    %6 = vector.load %arg3[%c0_4, %c0_5] : memref<128x1xf32, #tpu.memory_space<vmem>>, vector<128x1xf32>
    %7 = vector.broadcast %6 : vector<128x1xf32> to vector<128x128xf32>
    %8 = arith.mulf %5, %7 : vector<128x128xf32>
    %9 = arith.truncf %8 : vector<128x128xf32> to vector<128x128xbf16>
    %c0_6 = arith.constant 0 : index
    %c0_7 = arith.constant 0 : index
    %c0_8 = arith.constant 0 : index
    %10 = vector.load %arg4[%c0_6, %c0_7, %c0_8] : memref<1x256x128xbf16, #tpu.memory_space<vmem>>, vector<1x128x128xbf16>
    %11 = vector.shape_cast %10 : vector<1x128x128xbf16> to vector<128x128xbf16>
    %cst_9 = arith.constant dense<0.000000e+00> : vector<128x128xf32>
    %12 = tpu.matmul %9, %11, %cst_9 {dimension_numbers = #tpu.dot_dimension_numbers<[1], [0], [0], [1], [0, 0, 1, 1], [], []>} : vector<128x128xbf16>, vector<128x128xbf16>, vector<128x128xf32> -> vector<128x128xf32>
    %c0_10 = arith.constant 0 : index
    %c128 = arith.constant 128 : index
    %c0_11 = arith.constant 0 : index
    %13 = vector.load %arg4[%c0_10, %c128, %c0_11] : memref<1x256x128xbf16, #tpu.memory_space<vmem>>, vector<1x128x128xbf16>
    %14 = vector.shape_cast %13 : vector<1x128x128xbf16> to vector<128x128xbf16>
    %cst_12 = arith.constant dense<0.000000e+00> : vector<128x128xf32>
    %15 = tpu.matmul %3, %14, %cst_12 {dimension_numbers = #tpu.dot_dimension_numbers<[1], [0], [0], [1], [0, 0, 1, 1], [], []>} : vector<128x128xbf16>, vector<128x128xbf16>, vector<128x128xf32> -> vector<128x128xf32>
    %16 = arith.addf %12, %15 : vector<128x128xf32>
    %c0_13 = arith.constant 0 : index
    %c0_14 = arith.constant 0 : index
    %c0_15 = arith.constant 0 : index
    %17 = vector.load %arg5[%c0_13, %c0_14, %c0_15] : memref<1x8x128xf32, #tpu.memory_space<vmem>>, vector<1x1x128xf32>
    %18 = vector.shape_cast %17 : vector<1x1x128xf32> to vector<1x128xf32>
    %19 = vector.broadcast %18 : vector<1x128xf32> to vector<128x128xf32>
    %20 = arith.addf %16, %19 : vector<128x128xf32>
    %21 = arith.mulf %20, %20 : vector<128x128xf32>
    %cst_16 = arith.constant dense<0.000000e+00> : vector<128xf32>
    %22 = vector.multi_reduction <add>, %21, %cst_16 [1] : vector<128x128xf32> to vector<128xf32>
    %23 = vector.shape_cast %22 : vector<128xf32> to vector<128x1xf32>
    %cst_17 = arith.constant 1.000000e-24 : f32
    %24 = vector.broadcast %cst_17 : f32 to vector<128x1xf32>
    %25 = arith.maximumf %23, %24 : vector<128x1xf32>
    %26 = math.rsqrt %25 : vector<128x1xf32>
    %27 = vector.broadcast %26 : vector<128x1xf32> to vector<128x128xf32>
    %28 = arith.mulf %20, %27 : vector<128x128xf32>
    %c2_i32 = arith.constant 2 : i32
    %29 = arith.cmpi slt, %arg0, %c2_i32 : i32
    %30 = arith.extui %29 : i1 to i32
    %c0_i32_18 = arith.constant 0 : i32
    %31 = arith.cmpi ne, %30, %c0_i32_18 : i32
    scf.if %31 {
      %c0_21 = arith.constant 0 : index
      %c1 = arith.constant 1 : index
      %c0_22 = arith.constant 0 : index
      %35 = vector.load %arg5[%c0_21, %c1, %c0_22] : memref<1x8x128xf32, #tpu.memory_space<vmem>>, vector<1x1x128xf32>
      %36 = vector.shape_cast %35 : vector<1x1x128xf32> to vector<1x128xf32>
      %c0_23 = arith.constant 0 : index
      %c2 = arith.constant 2 : index
      %c0_24 = arith.constant 0 : index
      %37 = vector.load %arg5[%c0_23, %c2, %c0_24] : memref<1x8x128xf32, #tpu.memory_space<vmem>>, vector<1x1x128xf32>
      %38 = vector.shape_cast %37 : vector<1x1x128xf32> to vector<1x128xf32>
      %39 = tpu.iota {dimensions = array<i32: 0>} : vector<128x1xi32>
      %c16_i32 = arith.constant 16 : i32
      %40 = vector.broadcast %c16_i32 : i32 to vector<128x1xi32>
      %41 = arith.cmpi slt, %39, %40 : vector<128x1xi32>
      %42 = arith.extui %41 : vector<128x1xi1> to vector<128x1xi32>
      %43 = arith.sitofp %42 : vector<128x1xi32> to vector<128x1xf32>
      %44 = vector.broadcast %43 : vector<128x1xf32> to vector<128x128xf32>
      %45 = arith.mulf %28, %44 : vector<128x128xf32>
      %cst_25 = arith.constant dense<0.000000e+00> : vector<128xf32>
      %46 = vector.multi_reduction <add>, %45, %cst_25 [0] : vector<128x128xf32> to vector<128xf32>
      %47 = vector.shape_cast %46 : vector<128xf32> to vector<1x128xf32>
      %cst_26 = arith.constant 6.250000e-02 : f32
      %48 = vector.broadcast %cst_26 : f32 to vector<1x128xf32>
      %49 = arith.mulf %47, %48 : vector<1x128xf32>
      %50 = vector.broadcast %49 : vector<1x128xf32> to vector<128x128xf32>
      %51 = arith.subf %28, %50 : vector<128x128xf32>
      %52 = vector.broadcast %43 : vector<128x1xf32> to vector<128x128xf32>
      %53 = arith.mulf %51, %52 : vector<128x128xf32>
      %54 = arith.mulf %53, %53 : vector<128x128xf32>
      %cst_27 = arith.constant dense<0.000000e+00> : vector<128xf32>
      %55 = vector.multi_reduction <add>, %54, %cst_27 [0] : vector<128x128xf32> to vector<128xf32>
      %56 = vector.shape_cast %55 : vector<128xf32> to vector<1x128xf32>
      %cst_28 = arith.constant 6.250000e-02 : f32
      %57 = vector.broadcast %cst_28 : f32 to vector<1x128xf32>
      %58 = arith.mulf %56, %57 : vector<1x128xf32>
      %cst_29 = arith.constant 9.99999974E-6 : f32
      %59 = vector.broadcast %cst_29 : f32 to vector<1x128xf32>
      %60 = arith.addf %58, %59 : vector<1x128xf32>
      %61 = math.rsqrt %60 : vector<1x128xf32>
      %62 = vector.broadcast %61 : vector<1x128xf32> to vector<128x128xf32>
      %63 = arith.mulf %53, %62 : vector<128x128xf32>
      %64 = vector.broadcast %36 : vector<1x128xf32> to vector<128x128xf32>
      %65 = arith.mulf %63, %64 : vector<128x128xf32>
      %66 = vector.broadcast %38 : vector<1x128xf32> to vector<128x128xf32>
      %67 = arith.addf %65, %66 : vector<128x128xf32>
      %cst_30 = arith.constant 0.000000e+00 : f32
      %68 = vector.broadcast %cst_30 : f32 to vector<128x128xf32>
      %69 = arith.maximumf %67, %68 : vector<128x128xf32>
      %70 = vector.broadcast %43 : vector<128x1xf32> to vector<128x128xf32>
      %71 = arith.mulf %69, %70 : vector<128x128xf32>
      %72 = arith.truncf %71 : vector<128x128xf32> to vector<128x128xbf16>
      %c0_31 = arith.constant 0 : index
      %c0_32 = arith.constant 0 : index
      %73 = vector.load %arg7[%c0_31, %c0_32] : memref<128x128xbf16, #tpu.memory_space<vmem>>, vector<128x128xbf16>
      tpu.vector_store %arg7[%c0_31, %c0_32], %72 {strides = array<i32>} : memref<128x128xbf16, #tpu.memory_space<vmem>>, vector<128x128xbf16>,
    } else {
    }
    %c2_i32_19 = arith.constant 2 : i32
    %32 = arith.cmpi eq, %arg0, %c2_i32_19 : i32
    %33 = arith.extui %32 : i1 to i32
    %c0_i32_20 = arith.constant 0 : i32
    %34 = arith.cmpi ne, %33, %c0_i32_20 : i32
    scf.if %34 {
      %c0_21 = arith.constant 0 : index
      %c0_22 = arith.constant 0 : index
      %35 = vector.load %arg6[%c0_21, %c0_22] : memref<128x128xf32, #tpu.memory_space<vmem>>, vector<128x128xf32>
      tpu.vector_store %arg6[%c0_21, %c0_22], %28 {strides = array<i32>} : memref<128x128xf32, #tpu.memory_space<vmem>>, vector<128x128xf32>,
    } else {
    }
    return
  }
  func.func @transform_0(%arg0: i32) -> (i32, i32) {
    %c0_i32 = arith.constant 0 : i32
    %c0_i32_0 = arith.constant 0 : i32
    %c0_i32_1 = arith.constant 0 : i32
    return %c0_i32, %c0_i32_0 : i32, i32
  }
  func.func @transform_1(%arg0: i32) -> (i32, i32) {
    %c0_i32 = arith.constant 0 : i32
    %c0_i32_0 = arith.constant 0 : i32
    %c0_i32_1 = arith.constant 0 : i32
    return %c0_i32, %c0_i32_0 : i32, i32
  }
  func.func @transform_2(%arg0: i32) -> (i32, i32) {
    %c0_i32 = arith.constant 0 : i32
    %c0_i32_0 = arith.constant 0 : i32
    %c0_i32_1 = arith.constant 0 : i32
    return %c0_i32, %c0_i32_0 : i32, i32
  }
  func.func @transform_3(%arg0: i32) -> (i32, i32, i32) {
    %c0_i32 = arith.constant 0 : i32
    %c0_i32_0 = arith.constant 0 : i32
    %c0_i32_1 = arith.constant 0 : i32
    return %arg0, %c0_i32, %c0_i32_0 : i32, i32, i32
  }
  func.func @transform_4(%arg0: i32) -> (i32, i32, i32) {
    %c0_i32 = arith.constant 0 : i32
    %c0_i32_0 = arith.constant 0 : i32
    %c0_i32_1 = arith.constant 0 : i32
    return %arg0, %c0_i32, %c0_i32_0 : i32, i32, i32
  }
  func.func @transform_5(%arg0: i32) -> (i32, i32) {
    %c0_i32 = arith.constant 0 : i32
    %c0_i32_0 = arith.constant 0 : i32
    %c0_i32_1 = arith.constant 0 : i32
    return %c0_i32, %c0_i32_0 : i32, i32
  }
}

module attributes {stable_mosaic.version = 11 : i64} {
  func.func @_fused_encoder_kernel(%arg0: i32, %arg1: memref<128x128xbf16, #tpu.memory_space<vmem>>, %arg2: memref<128x128xbf16, #tpu.memory_space<vmem>>, %arg3: memref<128x1xf32, #tpu.memory_space<vmem>>, %arg4: memref<1x256x128xbf16, #tpu.memory_space<vmem>>, %arg5: memref<1x8x128xf32, #tpu.memory_space<vmem>>, %arg6: memref<128x128xf32, #tpu.memory_space<vmem>>, %arg7: memref<128x128xbf16, #tpu.memory_space<vmem>>) attributes {dimension_semantics = [#tpu.dimension_semantics<arbitrary>], iteration_bounds = array<i64: 3>, scalar_prefetch = 0 : i64, scratch_operands = 1 : i64, tpu.core_type = #tpu.core_type<tc>, window_params = [{pipeline_mode = #tpu.pipeline_mode<synchronous>, transform_indices = @transform_0, window_bounds = array<i64: 128, 128>}, {pipeline_mode = #tpu.pipeline_mode<synchronous>, transform_indices = @transform_1, window_bounds = array<i64: 128, 128>}, {pipeline_mode = #tpu.pipeline_mode<synchronous>, transform_indices = @transform_2, window_bounds = array<i64: 128, 1>}, {transform_indices = @transform_3, window_bounds = array<i64: 1, 256, 128>}, {transform_indices = @transform_4, window_bounds = array<i64: 1, 8, 128>}, {pipeline_mode = #tpu.pipeline_mode<synchronous>, transform_indices = @transform_5, window_bounds = array<i64: 128, 128>}]} {
    %c0_i32 = arith.constant 0 : i32
    %0 = arith.cmpi eq, %arg0, %c0_i32 : i32
    %1 = arith.extui %0 : i1 to i32
    %c0_i32_0 = arith.constant 0 : i32
    %2 = arith.cmpi ne, %1, %c0_i32_0 : i32
    scf.if %2 {
      %c0_21 = arith.constant 0 : index
      %c0_22 = arith.constant 0 : index
      %35 = vector.load %arg2[%c0_21, %c0_22] : memref<128x128xbf16, #tpu.memory_space<vmem>>, vector<128x128xbf16>
      %c0_23 = arith.constant 0 : index
      %c0_24 = arith.constant 0 : index
      %36 = vector.load %arg7[%c0_23, %c0_24] : memref<128x128xbf16, #tpu.memory_space<vmem>>, vector<128x128xbf16>
      tpu.vector_store %arg7[%c0_23, %c0_24], %35 {strides = array<i32>} : memref<128x128xbf16, #tpu.memory_space<vmem>>, vector<128x128xbf16>,
    } else {
    }
    %c0 = arith.constant 0 : index
    %c0_1 = arith.constant 0 : index
    %3 = vector.load %arg7[%c0, %c0_1] : memref<128x128xbf16, #tpu.memory_space<vmem>>, vector<128x128xbf16>
    %c0_2 = arith.constant 0 : index
    %c0_3 = arith.constant 0 : index
    %4 = vector.load %arg1[%c0_2, %c0_3] : memref<128x128xbf16, #tpu.memory_space<vmem>>, vector<128x128xbf16>
    %cst = arith.constant dense<0.000000e+00> : vector<128x128xf32>
    %5 = tpu.matmul %4, %3, %cst {dimension_numbers = #tpu.dot_dimension_numbers<[1], [0], [0], [1], [0, 0, 1, 1], [], []>} : vector<128x128xbf16>, vector<128x128xbf16>, vector<128x128xf32> -> vector<128x128xf32>
    %c0_4 = arith.constant 0 : index
    %c0_5 = arith.constant 0 : index
    %6 = vector.load %arg3[%c0_4, %c0_5] : memref<128x1xf32, #tpu.memory_space<vmem>>, vector<128x1xf32>
    %7 = vector.broadcast %6 : vector<128x1xf32> to vector<128x128xf32>
    %8 = arith.mulf %5, %7 : vector<128x128xf32>
    %9 = arith.truncf %8 : vector<128x128xf32> to vector<128x128xbf16>
    %c0_6 = arith.constant 0 : index
    %c0_7 = arith.constant 0 : index
    %c0_8 = arith.constant 0 : index
    %10 = vector.load %arg4[%c0_6, %c0_7, %c0_8] : memref<1x256x128xbf16, #tpu.memory_space<vmem>>, vector<1x128x128xbf16>
    %11 = vector.shape_cast %10 : vector<1x128x128xbf16> to vector<128x128xbf16>
    %cst_9 = arith.constant dense<0.000000e+00> : vector<128x128xf32>
    %12 = tpu.matmul %9, %11, %cst_9 {dimension_numbers = #tpu.dot_dimension_numbers<[1], [0], [0], [1], [0, 0, 1, 1], [], []>} : vector<128x128xbf16>, vector<128x128xbf16>, vector<128x128xf32> -> vector<128x128xf32>
    %c0_10 = arith.constant 0 : index
    %c128 = arith.constant 128 : index
    %c0_11 = arith.constant 0 : index
    %13 = vector.load %arg4[%c0_10, %c128, %c0_11] : memref<1x256x128xbf16, #tpu.memory_space<vmem>>, vector<1x128x128xbf16>
    %14 = vector.shape_cast %13 : vector<1x128x128xbf16> to vector<128x128xbf16>
    %cst_12 = arith.constant dense<0.000000e+00> : vector<128x128xf32>
    %15 = tpu.matmul %3, %14, %cst_12 {dimension_numbers = #tpu.dot_dimension_numbers<[1], [0], [0], [1], [0, 0, 1, 1], [], []>} : vector<128x128xbf16>, vector<128x128xbf16>, vector<128x128xf32> -> vector<128x128xf32>
    %16 = arith.addf %12, %15 : vector<128x128xf32>
    %c0_13 = arith.constant 0 : index
    %c0_14 = arith.constant 0 : index
    %c0_15 = arith.constant 0 : index
    %17 = vector.load %arg5[%c0_13, %c0_14, %c0_15] : memref<1x8x128xf32, #tpu.memory_space<vmem>>, vector<1x1x128xf32>
    %18 = vector.shape_cast %17 : vector<1x1x128xf32> to vector<1x128xf32>
    %19 = vector.broadcast %18 : vector<1x128xf32> to vector<128x128xf32>
    %20 = arith.addf %16, %19 : vector<128x128xf32>
    %21 = arith.mulf %20, %20 : vector<128x128xf32>
    %cst_16 = arith.constant dense<0.000000e+00> : vector<128xf32>
    %22 = vector.multi_reduction <add>, %21, %cst_16 [1] : vector<128x128xf32> to vector<128xf32>
    %23 = vector.shape_cast %22 : vector<128xf32> to vector<128x1xf32>
    %cst_17 = arith.constant 1.000000e-24 : f32
    %24 = vector.broadcast %cst_17 : f32 to vector<128x1xf32>
    %25 = arith.maximumf %23, %24 : vector<128x1xf32>
    %26 = math.rsqrt %25 : vector<128x1xf32>
    %27 = vector.broadcast %26 : vector<128x1xf32> to vector<128x128xf32>
    %28 = arith.mulf %20, %27 : vector<128x128xf32>
    %c2_i32 = arith.constant 2 : i32
    %29 = arith.cmpi slt, %arg0, %c2_i32 : i32
    %30 = arith.extui %29 : i1 to i32
    %c0_i32_18 = arith.constant 0 : i32
    %31 = arith.cmpi ne, %30, %c0_i32_18 : i32
    scf.if %31 {
      %c0_21 = arith.constant 0 : index
      %c1 = arith.constant 1 : index
      %c0_22 = arith.constant 0 : index
      %35 = vector.load %arg5[%c0_21, %c1, %c0_22] : memref<1x8x128xf32, #tpu.memory_space<vmem>>, vector<1x1x128xf32>
      %36 = vector.shape_cast %35 : vector<1x1x128xf32> to vector<1x128xf32>
      %c0_23 = arith.constant 0 : index
      %c2 = arith.constant 2 : index
      %c0_24 = arith.constant 0 : index
      %37 = vector.load %arg5[%c0_23, %c2, %c0_24] : memref<1x8x128xf32, #tpu.memory_space<vmem>>, vector<1x1x128xf32>
      %38 = vector.shape_cast %37 : vector<1x1x128xf32> to vector<1x128xf32>
      %39 = tpu.iota {dimensions = array<i32: 0>} : vector<128x1xi32>
      %c16_i32 = arith.constant 16 : i32
      %40 = vector.broadcast %c16_i32 : i32 to vector<128x1xi32>
      %41 = arith.cmpi slt, %39, %40 : vector<128x1xi32>
      %42 = arith.extui %41 : vector<128x1xi1> to vector<128x1xi32>
      %43 = arith.sitofp %42 : vector<128x1xi32> to vector<128x1xf32>
      %44 = vector.broadcast %43 : vector<128x1xf32> to vector<128x128xf32>
      %45 = arith.mulf %28, %44 : vector<128x128xf32>
      %cst_25 = arith.constant dense<0.000000e+00> : vector<128xf32>
      %46 = vector.multi_reduction <add>, %45, %cst_25 [0] : vector<128x128xf32> to vector<128xf32>
      %47 = vector.shape_cast %46 : vector<128xf32> to vector<1x128xf32>
      %cst_26 = arith.constant 6.250000e-02 : f32
      %48 = vector.broadcast %cst_26 : f32 to vector<1x128xf32>
      %49 = arith.mulf %47, %48 : vector<1x128xf32>
      %50 = vector.broadcast %49 : vector<1x128xf32> to vector<128x128xf32>
      %51 = arith.subf %28, %50 : vector<128x128xf32>
      %52 = vector.broadcast %43 : vector<128x1xf32> to vector<128x128xf32>
      %53 = arith.mulf %51, %52 : vector<128x128xf32>
      %54 = arith.mulf %53, %53 : vector<128x128xf32>
      %cst_27 = arith.constant dense<0.000000e+00> : vector<128xf32>
      %55 = vector.multi_reduction <add>, %54, %cst_27 [0] : vector<128x128xf32> to vector<128xf32>
      %56 = vector.shape_cast %55 : vector<128xf32> to vector<1x128xf32>
      %cst_28 = arith.constant 6.250000e-02 : f32
      %57 = vector.broadcast %cst_28 : f32 to vector<1x128xf32>
      %58 = arith.mulf %56, %57 : vector<1x128xf32>
      %cst_29 = arith.constant 9.99999974E-6 : f32
      %59 = vector.broadcast %cst_29 : f32 to vector<1x128xf32>
      %60 = arith.addf %58, %59 : vector<1x128xf32>
      %61 = math.rsqrt %60 : vector<1x128xf32>
      %62 = vector.broadcast %61 : vector<1x128xf32> to vector<128x128xf32>
      %63 = arith.mulf %53, %62 : vector<128x128xf32>
      %64 = vector.broadcast %36 : vector<1x128xf32> to vector<128x128xf32>
      %65 = arith.mulf %63, %64 : vector<128x128xf32>
      %66 = vector.broadcast %38 : vector<1x128xf32> to vector<128x128xf32>
      %67 = arith.addf %65, %66 : vector<128x128xf32>
      %cst_30 = arith.constant 0.000000e+00 : f32
      %68 = vector.broadcast %cst_30 : f32 to vector<128x128xf32>
      %69 = arith.maximumf %67, %68 : vector<128x128xf32>
      %70 = vector.broadcast %43 : vector<128x1xf32> to vector<128x128xf32>
      %71 = arith.mulf %69, %70 : vector<128x128xf32>
      %72 = arith.truncf %71 : vector<128x128xf32> to vector<128x128xbf16>
      %c0_31 = arith.constant 0 : index
      %c0_32 = arith.constant 0 : index
      %73 = vector.load %arg7[%c0_31, %c0_32] : memref<128x128xbf16, #tpu.memory_space<vmem>>, vector<128x128xbf16>
      tpu.vector_store %arg7[%c0_31, %c0_32], %72 {strides = array<i32>} : memref<128x128xbf16, #tpu.memory_space<vmem>>, vector<128x128xbf16>,
    } else {
    }
    %c2_i32_19 = arith.constant 2 : i32
    %32 = arith.cmpi eq, %arg0, %c2_i32_19 : i32
    %33 = arith.extui %32 : i1 to i32
    %c0_i32_20 = arith.constant 0 : i32
    %34 = arith.cmpi ne, %33, %c0_i32_20 : i32
    scf.if %34 {
      %c0_21 = arith.constant 0 : index
      %c0_22 = arith.constant 0 : index
      %35 = vector.load %arg6[%c0_21, %c0_22] : memref<128x128xf32, #tpu.memory_space<vmem>>, vector<128x128xf32>
      tpu.vector_store %arg6[%c0_21, %c0_22], %28 {strides = array<i32>} : memref<128x128xf32, #tpu.memory_space<vmem>>, vector<128x128xf32>,
    } else {
    }
    return
  }
  func.func @transform_0(%arg0: i32) -> (i32, i32) {
    %c0_i32 = arith.constant 0 : i32
    %c0_i32_0 = arith.constant 0 : i32
    %c0_i32_1 = arith.constant 0 : i32
    return %c0_i32, %c0_i32_0 : i32, i32
  }
  func.func @transform_1(%arg0: i32) -> (i32, i32) {
    %c0_i32 = arith.constant 0 : i32
    %c0_i32_0 = arith.constant 0 : i32
    %c0_i32_1 = arith.constant 0 : i32
    return %c0_i32, %c0_i32_0 : i32, i32
  }
  func.func @transform_2(%arg0: i32) -> (i32, i32) {
    %c0_i32 = arith.constant 0 : i32
    %c0_i32_0 = arith.constant 0 : i32
    %c0_i32_1 = arith.constant 0 : i32
    return %c0_i32, %c0_i32_0 : i32, i32
  }
  func.func @transform_3(%arg0: i32) -> (i32, i32, i32) {
    %c0_i32 = arith.constant 0 : i32
    %c0_i32_0 = arith.constant 0 : i32
    %c0_i32_1 = arith.constant 0 : i32
    return %arg0, %c0_i32, %c0_i32_0 : i32, i32, i32
  }
  func.func @transform_4(%arg0: i32) -> (i32, i32, i32) {
    %c0_i32 = arith.constant 0 : i32
    %c0_i32_0 = arith.constant 0 : i32
    %c0_i32_1 = arith.constant 0 : i32
    return %arg0, %c0_i32, %c0_i32_0 : i32, i32, i32
  }
  func.func @transform_5(%arg0: i32) -> (i32, i32) {
    %c0_i32 = arith.constant 0 : i32
    %c0_i32_0 = arith.constant 0 : i32
    %c0_i32_1 = arith.constant 0 : i32
    return %c0_i32, %c0_i32_0 : i32, i32
  }
}

</mosaic_0001>

<bundles_post_ra>
// kernel: tpu_custom_call.1
= control target key start
LH: loop header
LB: loop body
LE: loop exit
PB: predicated region body
PF: predicated region fallthrough
CT: control target
= control target key end

     0   :  { %10 = vsyncpa [#allocation4], 0  ;;  %s2719_s0 = inlined_call_operand.vmem [shape: bf16[128,128], index: 0, kind: input, shape index: {}]   ;;  %s2720_s1 = inlined_call_operand.vmem [shape: bf16[128,128], index: 1, kind: input, shape index: {}]   ;;  %s2721_s2 = inlined_call_operand.vmem [shape: f32[128,1], index: 2, kind: input, shape index: {}]   ;;  %s2722_s3 = inlined_call_operand.hbm [shape: bf16[3,256,128], index: 3, kind: input, shape index: {}]   ;;  %s2723_s4 = inlined_call_operand.hbm [shape: f32[3,8,128], index: 4, kind: input, shape index: {}]   ;;  %s2724_s5 = inlined_call_operand.hbm [shape: f32[128,128], index: 5, kind: output, shape index: {}]  }
   0x1   :  { %12 = vsyncpa [#allocation4 + $0x1], 0 }
   0x2   :  { %13 = vsyncpa [#allocation7], 0 }
   0x3   :  { %15 = vsyncpa [#allocation7 + $0x1], 0 }
   0x4   :  { %16 = vsyncpa [#allocation5], 0  ;;  %s2119_s18 = smov 0   ;;  %s2121_s19 = smov 0  }
   0x5   :  { %s2123_s20 = smov 0   ;;  %s2125_s21 = smov 0  }
   0x6 LB: > { %s2138_s22 = sadd.s32 4294967295, %s2079_s21   ;;  %s2141_s23 = sadd.s32 1, %s2079_s21   ;;  %s2079_s21 = sphi %s2125_s21, %s2735_s21   ;;  %s2075_s20 = sphi %s2123_s20, %s2734_s20   ;;  %s2071_s19 = sphi %s2121_s19, %s2733_s19   ;;  %s2067_s18 = sphi %s2119_s18, %s2732_s18  }
   0x7   : > { %s89_s24 = ssub.s32 %s2079_s21, %s2141_s23  ;;  %s92_s25 = sadd.s32 1, %s2075_s20 }
   0x8   : > { %p90_p0 = scmp.eq.s32.totalorder %s89_s24, 0  ;;  %p99_p1 = scmp.ne.s32.totalorder %s2075_s20, %s2071_s19 }
   0x9   : > { %p100_p2 = scmp.eq.s32.totalorder %s2079_s21, 0  ;;  %p105_p3 = scmp.ne.s32.totalorder %s2071_s19, %s2067_s18 }
   0xa   : > { %s2151_s26 = scalar_select %p90_p0, %s2075_s20, %s92_s25  }
   0xb   : > { %p101_p4 = por %p100_p2, %p99_p1  ;;  %p106_p5 = scmp.eq.s32.totalorder %s2138_s22, 0 }
   0xc   : > { %p1848_p6 = scmp.lt.s32.totalorder %s2079_s21, 3  ;;  %s2160_s28 = sand.u32 1, %s2075_s20  }
   0xd   : > { %p2155_p7 = por %p106_p5, %p105_p3  ;;  %s1543_s29 = sshll.u32 %s2160_s28, 7 }
   0xe   : > { %s1609_s30 = sshll.u32 %s2079_s21, 11  ;;  %s189_s9 = scalar_lea.vmem [#allocation3], %s1543_s29 }
   0xf   : > { %s2726_s27 = scalar_select %p2155_p7, 1, 0 }
  0x10   : > { %s2167_s8 = scalar_lea.hbm %s2722_s3, %s1609_s30  ;;  %s196_s10 = sshll.u32 %s189_s9, 4  ;;  %s2169_s10 = int_to_ptr.vmem [resolvable:$true] %s196_s10 }
  0x11   : > { %p2171_p8 = pnand %p1848_p6, %p101_p4  ;;  %s186_s12 = scalar_lea.sflag [#allocation4], %s2160_s28 }
  0x12   : > { %s1957_s13 = scalar_lea.hbm %s2167_s8, 2048  ;;  %s1962_s16 = scalar_lea.hbm %s2722_s3, 6144 }
  0x13   : > { %p1958_p10 = scmp.ne.s32.totalorder %s2167_s8, %s1957_s13  ;;  %p1959_p11 = pneg %p2171_p8 }
  0x14   : > { %p1963_p0 = scmp.lt.s32.totalorder %s2167_s8, %s2722_s3  ;;  %p1964_p1 = scmp.lt.s32.totalorder %s1962_s16, %s1957_s13 }
  0x15   : > { %p1960_p12 = pnand %p1959_p11, %p1958_p10 }
  0x16   : > { %p1965_p2 = por %p1964_p1, %p1963_p0 }
  0x17   : > { %p1961_p13 = pneg %p1960_p12 }
  0x19   : > { %p1966_p3 = pnand %p1965_p2, %p1961_p13 }
  0x1b   : > { %1969 = shalt.err (!%p1966_p3)
}
  0x1c   : > { %s1970_s24 = scalar_lea.vmem %s2169_s10, 2048  ;;  %s2081_s25 = smov [#allocation3]  }
  0x1d   : > { %p1971_p4 = scmp.ne.s32.totalorder %s2169_s10, %s1970_s24  ;;  %s1975_s29 = sshll.u32 %s2081_s25, 4  ;;  %s1976_s29 = int_to_ptr.vmem [resolvable:$false] %s1975_s29 }
  0x1e   : > { %s1977_s30 = scalar_lea.vmem %s1976_s29, 4096  ;;  %p1978_p10 = scmp.lt.s32.totalorder %s2169_s10, %s1976_s29 }
  0x1f   : > { %p1973_p5 = pnand %p1971_p4, %p1959_p11  ;;  %p1979_p12 = scmp.lt.s32.totalorder %s1977_s30, %s1970_s24 }
  0x21   : > { %p1974_p6 = pneg %p1973_p5  ;;  %p1980_p9 = por %p1979_p12, %p1978_p10 }
  0x23   : > { %p1981_p0 = pnand %p1980_p9, %p1974_p6 }
  0x25   : > { %1984 = shalt.err (!%p1981_p0)
}
  0x26   : > { %s2082_s6 = smov 64   ;;  %s2083_s7 = smov 4  }
  0x27   : > { %1844 = dma.hbm_to_vmem [thread:$0]  (!%p2171_p8), %s2167_s8, 2048, %s2169_s10, %s186_s12, %s2082_s6, %s2082_s6, %s2083_s7  }
  0x28   : > { %p222_p13 = scmp.lt.s32.totalorder %s2079_s21, 4  ;;  %s1546_s9 = sshll.u32 %s2160_s28, 3 }
  0x29   : > { %s1547_s13 = sshll.u32 %s2079_s21, 7  ;;  %p2728_p9 = scmp.ge.s32.totalorder %s2079_s21, 1 }
  0x2a   : > { %s2215_s17 = scalar_lea.hbm %s2723_s4, %s1547_s13  ;;  %s210_s18 = scalar_lea.vmem [#allocation6], %s1546_s9 }
  0x2b   : > { %p2208_p1 = pnand %p2728_p9, %p222_p13  ;;  %s217_s24 = sshll.u32 %s210_s18, 4  ;;  %s218_s24 = int_to_ptr.vmem [resolvable:$true] %s217_s24 }
  0x2c   : > { %s207_s8 = scalar_lea.sflag [#allocation7], %s2160_s28  ;;  %s1985_s10 = scalar_lea.hbm %s2215_s17, 128 }
  0x2d   : > { %s2729_s14 = scalar_select %p2208_p1, 1, 0 }
  0x2e   : > { %p1986_p2 = scmp.ne.s32.totalorder %s2215_s17, %s1985_s10  ;;  %s1990_s25 = scalar_lea.hbm %s2723_s4, 384 }
  0x2f   : > { %p1991_p5 = scmp.lt.s32.totalorder %s2215_s17, %s2723_s4  ;;  %p1992_p6 = scmp.lt.s32.totalorder %s1990_s25, %s1985_s10 }
  0x30   : > { %p1988_p3 = pnand %p1986_p2, %p1959_p11 }
  0x31   : > { %p1993_p10 = por %p1992_p6, %p1991_p5 }
  0x32   : > { %p1989_p4 = pneg %p1988_p3 }
  0x34   : > { %p1994_p12 = pnand %p1993_p10, %p1989_p4 }
  0x36   : > { %1997 = shalt.err (!%p1994_p12)
}
  0x37   : > { %s1998_s6 = scalar_lea.vmem %s218_s24, 128  ;;  %s2084_s28 = smov [#allocation6]  }
  0x38   : > { %p1999_p0 = scmp.ne.s32.totalorder %s218_s24, %s1998_s6  ;;  %s2003_s7 = sshll.u32 %s2084_s28, 4  ;;  %s2004_s7 = int_to_ptr.vmem [resolvable:$false] %s2003_s7 }
  0x39   : > { %s2005_s9 = scalar_lea.vmem %s2004_s7, 256  ;;  %p2006_p2 = scmp.lt.s32.totalorder %s218_s24, %s2004_s7 }
  0x3a   : > { %p2001_p13 = pnand %p1999_p0, %p1959_p11  ;;  %p2007_p3 = scmp.lt.s32.totalorder %s2005_s9, %s1998_s6 }
  0x3c   : > { %p2002_p9 = pneg %p2001_p13  ;;  %p2008_p7 = por %p2007_p3, %p2006_p2 }
  0x3e   : > { %p2009_p1 = pnand %p2008_p7, %p2002_p9 }
  0x40   : > { %2012 = shalt.err (!%p2009_p1)
}
  0x41   : > { %1847 = dma.hbm_to_vmem [thread:$0]  (!%p2171_p8), %s2215_s17, 128, %s218_s24, %s207_s8  }
  0x42   : > { %p2730_p4 = scmp.ne.s32.totalorder %s2729_s14, 0 }
  0x43   : > { %s228_s13 = sand.u32 (!%p2730_p4), 1, %s2071_s19   ;;  %p2731_p11 = scmp.ne.s32.totalorder (!%p2730_p4), %s2726_s27, 0 }
  0x44   : > { %226 = sbr.rel (%p2730_p4) target bundleno = 886 (0x376), region = 40  ;;  %s1549_s15 = sshll.u32 (!%p2730_p4), %s228_s13, 7 }
  0x45   : > { %s229_s16 = scalar_lea.sflag (!%p2730_p4), [#allocation4], %s228_s13  ;;  %s2239_s18 = scalar_lea.vmem (!%p2730_p4), [#allocation3], %s1549_s15 }
  0x49   : > { %2054 = dma.done.wait (%p2731_p11), %s229_s16, 2048  }
  0x4a   : > { %2056 = vsyncadd (%p2731_p11), %s229_s16, 4294965248  ;;  %s1550_s10 = sshll.u32 %s228_s13, 3  ;;  %s238_s11 = scalar_lea.sflag [#allocation7], %s228_s13 }
  0x4b   : > { %s2245_s21 = scalar_lea.vmem [#allocation6], %s1550_s10 }
  0x4c   : > { %2058 = dma.done.wait (%p2731_p11), %s238_s11, 128  }
  0x4d   : > { %2060 = vsyncadd (%p2731_p11), %s238_s11, 4294967168  ;;  %p1551_p7 = scmp.ne.s32.totalorder %s2138_s22, 0 }
  0x4f   : > { %272 = sbr.rel (%p1551_p7) target bundleno = 89 (0x59), region = 52 }
  0x54   : > { %v273_v0 = vld [vmem:[%s2720_s1] sm:$0xff]   ;;  %v275_v1 = vld [vmem:[%s2720_s1 + $0x8] sm:$0xff]   ;;  %v277_v2 = vld [vmem:[%s2720_s1 + $0x10] sm:$0xff]  }
  0x55   : > { %289 = vst [vmem:[#allocation2] sm:$0xff] %v273_v0   ;;  %291 = vst [vmem:[#allocation2 + $0x8] sm:$0xff] %v275_v1   ;;  %v279_v3 = vld [vmem:[%s2720_s1 + $0x18] sm:$0xff]   ;;  %v281_v4 = vld [vmem:[%s2720_s1 + $0x20] sm:$0xff]  }
  0x56   : > { %293 = vst [vmem:[#allocation2 + $0x10] sm:$0xff] %v277_v2   ;;  %v283_v5 = vld [vmem:[%s2720_s1 + $0x28] sm:$0xff]   ;;  %295 = vst [vmem:[#allocation2 + $0x18] sm:$0xff] %v279_v3   ;;  %v285_v6 = vld [vmem:[%s2720_s1 + $0x30] sm:$0xff]  }
  0x57   : > { %297 = vst [vmem:[#allocation2 + $0x20] sm:$0xff] %v281_v4   ;;  %299 = vst [vmem:[#allocation2 + $0x28] sm:$0xff] %v283_v5   ;;  %v287_v7 = vld [vmem:[%s2720_s1 + $0x38] sm:$0xff]  }
  0x58   : > { %301 = vst [vmem:[#allocation2 + $0x30] sm:$0xff] %v285_v6   ;;  %303 = vst [vmem:[#allocation2 + $0x38] sm:$0xff] %v287_v7  }
  0x59 PF: > { %v2085_v10 = vmov 0   ;;  %v1899_v14 = vld [vmem:[%s2719_s0] sm:$0xff]   ;;  %v539_v19 = vld [vmem:[%s2721_s2 + $0x48] sm:$0xff]  ;;  %v533_v22 = vld [vmem:[%s2721_s2 + $0x18] sm:$0xff]  ;;  %p1585_p8 = scmp.ge.s32.totalorder %s2138_s22, 2 }
  0x5a   : > { %1890 = vset.pattern.permute.xlu1 %v2085_v10  ;;  %1889 = vset.pattern.permute.xlu0 %v2085_v10  ;;  %v538_v17 = vld [vmem:[%s2721_s2 + $0x40] sm:$0xff]  ;;  %v531_v20 = vld [vmem:[%s2721_s2 + $0x8] sm:$0xff]  ;;  %v532_v23 = vld [vmem:[%s2721_s2 + $0x10] sm:$0xff] }
  0x5b   : > { %1737 = vmatprep.mubr.bf16.mxu0 %v1899_v14  ;;  %v530_v18 = vld [vmem:[%s2721_s2] sm:$0xff]  ;;  %588 = vperm.xlu1 %1890, %v538_v17   ;;  %v1907_v24 = vld [vmem:[%s2239_s18 + $0x78] sm:$0xff]   ;;  %v1908_v25 = vld [vmem:[%s2239_s18 + $0x70] sm:$0xff]  }
  0x5c   : > { %v1898_v13 = vld [vmem:[#allocation2] sm:$0xff]   ;;  %548 = vperm.xlu0 %1889, %v530_v18   ;;  %v2314_v21 = vld [vmem:[#allocation2 + $0x8] sm:$0xff]   ;;  %1753 = vmatprep.subr.bf16.mxu1 %v1907_v24  ;;  %v541_v26 = vld [vmem:[%s2721_s2 + $0x58] sm:$0xff] }
  0x5d   : > { %1769 = vmatprep.mubr.bf16.mxu1 %v1898_v13  ;;  %v2294_v15 = vld [vmem:[#allocation2 + $0x18] sm:$0xff]   ;;  %v2298_v16 = vld [vmem:[#allocation2 + $0x10] sm:$0xff]   ;;  %1754 = vmatpush3.bf16.msra.mxu1 %v1907_v24  ;;  %v1909_v28 = vld [vmem:[%s2239_s18 + $0x68] sm:$0xff]  }
  0x5e   : > { %v2283_v11 = vld [vmem:[#allocation2 + $0x28] sm:$0xff]   ;;  %v2285_v12 = vld [vmem:[#allocation2 + $0x20] sm:$0xff]   ;;  %v540_v27 = vld [vmem:[%s2721_s2 + $0x50] sm:$0xff]  ;;  %1755 = vmatprep.subr.bf16.mxu1 %v1908_v25 }
  0x5f   : > { %v2276_v8 = vld [vmem:[#allocation2 + $0x38] sm:$0xff]   ;;  %v2278_v9 = vld [vmem:[#allocation2 + $0x30] sm:$0xff]   ;;  %593 = vperm.xlu1 %1890, %v539_v19   ;;  %v1900_v29 = vld [vmem:[%s2719_s0 + $0x8] sm:$0xff]  }
  0x60   : > { %1721 = vmatprep.subr.bf16.mxu0 %v2276_v8  ;;  %553 = vperm.xlu0 %1889, %v531_v20   ;;  %v535_v30 = vld [vmem:[%s2721_s2 + $0x28] sm:$0xff]  ;;  %v2341_v31 = vld [vmem:[%s2239_s18 + $0x38] sm:$0xff]   ;;  %v1901_v32 = vld [vmem:[%s2719_s0 + $0x10] sm:$0xff]  }
  0x61   : > { %1722 = vmatpush3.bf16.msra.mxu0 %v2276_v8  ;;  %v534_v33 = vld [vmem:[%s2721_s2 + $0x20] sm:$0xff]  ;;  %1756 = vmatpush3.bf16.msra.mxu1 %v1908_v25  ;;  %v543_v35 = vld [vmem:[%s2721_s2 + $0x68] sm:$0xff]  ;;  %v1915_v37 = vld [vmem:[%s2239_s18 + $0x30] sm:$0xff]  }
  0x62   : > { %1723 = vmatprep.subr.bf16.mxu0 %v2278_v9  ;;  %v1910_v34 = vld [vmem:[%s2239_s18 + $0x60] sm:$0xff]   ;;  %1757 = vmatprep.subr.bf16.mxu1 %v1909_v28  ;;  %v1911_v38 = vld [vmem:[%s2239_s18 + $0x58] sm:$0xff]   ;;  %v536_v41 = vld [vmem:[%s2721_s2 + $0x30] sm:$0xff] }
  0x63   : > { %563 = vperm.xlu1 %1890, %v533_v22   ;;  %v542_v36 = vld [vmem:[%s2721_s2 + $0x60] sm:$0xff]  ;;  %v1902_v39 = vld [vmem:[%s2719_s0 + $0x18] sm:$0xff]   ;;  %v1912_v43 = vld [vmem:[%s2239_s18 + $0x50] sm:$0xff]  }
  0x64   : > { %558 = vperm.xlu0 %1889, %v532_v23   ;;  %v537_v40 = vld [vmem:[%s2721_s2 + $0x38] sm:$0xff]  ;;  %v1903_v42 = vld [vmem:[%s2719_s0 + $0x20] sm:$0xff]   ;;  %v1917_v44 = vld [vmem:[%s2239_s18 + $0x28] sm:$0xff]  }
  0x65   : > { %1724 = vmatpush3.bf16.msra.mxu0 %v2278_v9  ;;  %1758 = vmatpush3.bf16.msra.mxu1 %v1909_v28  ;;  %v545_v45 = vld [vmem:[%s2721_s2 + $0x78] sm:$0xff]  ;;  %v544_v46 = vld [vmem:[%s2721_s2 + $0x70] sm:$0xff]  ;;  %v1914_v47 = vld [vmem:[%s2239_s18 + $0x48] sm:$0xff]  }
  0x66   : > { %1725 = vmatprep.subr.bf16.mxu0 %v2283_v11  ;;  %1759 = vmatprep.subr.bf16.mxu1 %v1910_v34  ;;  %v1918_v48 = vld [vmem:[%s2239_s18 + $0x20] sm:$0xff]   ;;  %v1904_v49 = vld [vmem:[%s2719_s0 + $0x28] sm:$0xff]   ;;  %v1905_v50 = vld [vmem:[%s2719_s0 + $0x30] sm:$0xff]  }
  0x67   : > { %603 = vperm.xlu1 %1890, %v541_v26   ;;  %v1916_v51 = vld [vmem:[%s2239_s18 + $0x40] sm:$0xff]   ;;  %v1919_v52 = vld [vmem:[%s2239_s18 + $0x18] sm:$0xff]   ;;  %v1920_v54 = vld [vmem:[%s2239_s18 + $0x10] sm:$0xff]  }
  0x68   : > { %598 = vperm.xlu0 %1889, %v540_v27   ;;  %v1906_v53 = vld [vmem:[%s2719_s0 + $0x38] sm:$0xff]   ;;  %v1921_v55 = vld [vmem:[%s2239_s18 + $0x8] sm:$0xff]   ;;  %v1922_v56 = vld [vmem:[%s2239_s18] sm:$0xff]  }
  0x69   : > { %1726 = vmatpush3.bf16.msra.mxu0 %v2283_v11  ;;  %1760 = vmatpush3.bf16.msra.mxu1 %v1910_v34 }
  0x6a   : > { %1727 = vmatprep.subr.bf16.mxu0 %v2285_v12  ;;  %1761 = vmatprep.subr.bf16.mxu1 %v1911_v38 }
  0x6b   : > { %573 = vperm.xlu1 %1890, %v535_v30  }
  0x6c   : > { %568 = vperm.xlu0 %1889, %v534_v33  }
  0x6d   : > { %1728 = vmatpush3.bf16.msra.mxu0 %v2285_v12  ;;  %1762 = vmatpush3.bf16.msra.mxu1 %v1911_v38 }
  0x6e   : > { %1729 = vmatprep.subr.bf16.mxu0 %v2294_v15  ;;  %1763 = vmatprep.subr.bf16.mxu1 %v1912_v43 }
  0x6f   : > { %613 = vperm.xlu1 %1890, %v543_v35  }
  0x70   : > { %608 = vperm.xlu0 %1889, %v542_v36  }
  0x71   : > { %1730 = vmatpush3.bf16.msra.mxu0 %v2294_v15  ;;  %1764 = vmatpush3.bf16.msra.mxu1 %v1912_v43 }
  0x72   : > { %1731 = vmatprep.subr.bf16.mxu0 %v2298_v16  ;;  %1765 = vmatprep.subr.bf16.mxu1 %v1914_v47 }
  0x73   : > { %583 = vperm.xlu1 %1890, %v537_v40  }
  0x74   : > { %578 = vperm.xlu0 %1889, %v536_v41  }
  0x75   : > { %1732 = vmatpush3.bf16.msra.mxu0 %v2298_v16  ;;  %1766 = vmatpush3.bf16.msra.mxu1 %v1914_v47 }
  0x76   : > { %1733 = vmatprep.subr.bf16.mxu0 %v2314_v21  ;;  %1767 = vmatprep.subr.bf16.mxu1 %v1916_v51 }
  0x77   : > { %623 = vperm.xlu1 %1890, %v545_v45  }
  0x78   : > { %618 = vperm.xlu0 %1889, %v544_v46  }
  0x79   : > { %1734 = vmatpush3.bf16.msra.mxu0 %v2314_v21  ;;  %1768 = vmatpush3.bf16.msra.mxu1 %v1916_v51 }
  0x7a   : > { %1735 = vmatprep.subr.bf16.mxu0 %v1898_v13  ;;  %1817 = vmatprep.subr.bf16.mxu1 %v2341_v31 }
  0x7c   : > { %1770 = vmatmul.mubr.bf16.vlgmr.msra.gmra.mxu1 %v2314_v21 }
  0x7d   : > { %1736 = vmatpush3.bf16.msra.mxu0 %v1898_v13  ;;  %1825 = vmatpush3.bf16.msra.mxu1 %v2341_v31 }
  0x7e   : > { %1785 = vmatprep.subr.bf16.mxu0 %v2341_v31  ;;  %1773 = vmatprep.mubr.bf16.mxu1 %v2298_v16 }
  0x7f   : > { %1818 = vmatprep.subr.bf16.mxu1 %v1915_v37 }
  0x80   : > { %1738 = vmatmul.mubr.bf16.vlgmr.msra.gmra.mxu0 %v1900_v29 }
  0x81   : > { %1741 = vmatprep.mubr.bf16.mxu0 %v1901_v32  ;;  %1786 = vmatpush3.bf16.msra.mxu0 %v2341_v31 }
  0x82   : > { %1787 = vmatprep.subr.bf16.mxu0 %v1915_v37  ;;  %1826 = vmatpush3.bf16.msra.mxu1 %v1915_v37 }
  0x83   : > { %1819 = vmatprep.subr.bf16.mxu1 %v1917_v44 }
  0x84   : > { %1774 = vmatmul.mubr.bf16.gmra.mxu1 %v2294_v15 }
  0x85   : > { %1788 = vmatpush3.bf16.msra.mxu0 %v1915_v37  ;;  %1777 = vmatprep.mubr.bf16.mxu1 %v2285_v12 }
  0x86   : > { %1789 = vmatprep.subr.bf16.mxu0 %v1917_v44  ;;  %1827 = vmatpush3.bf16.msra.mxu1 %v1917_v44 }
  0x87   : > { %1820 = vmatprep.subr.bf16.mxu1 %v1918_v48 }
  0x88   : > { %1742 = vmatmul.mubr.bf16.gmra.mxu0 %v1902_v39 }
  0x89   : > { %1745 = vmatprep.mubr.bf16.mxu0 %v1903_v42  ;;  %1790 = vmatpush3.bf16.msra.mxu0 %v1917_v44 }
  0x8a   : > { %1791 = vmatprep.subr.bf16.mxu0 %v1918_v48  ;;  %1828 = vmatpush3.bf16.msra.mxu1 %v1918_v48 }
  0x8b   : > { %1821 = vmatprep.subr.bf16.mxu1 %v1919_v52 }
  0x8c   : > { %1778 = vmatmul.mubr.bf16.gmra.mxu1 %v2283_v11 }
  0x8d   : > { %1792 = vmatpush3.bf16.msra.mxu0 %v1918_v48  ;;  %1781 = vmatprep.mubr.bf16.mxu1 %v2278_v9 }
  0x8e   : > { %1793 = vmatprep.subr.bf16.mxu0 %v1919_v52  ;;  %1829 = vmatpush3.bf16.msra.mxu1 %v1919_v52 }
  0x8f   : > { %1822 = vmatprep.subr.bf16.mxu1 %v1920_v54 }
  0x90   : > { %1746 = vmatmul.mubr.bf16.gmra.mxu0 %v1904_v49 }
  0x91   : > { %1749 = vmatprep.mubr.bf16.mxu0 %v1905_v50  ;;  %1794 = vmatpush3.bf16.msra.mxu0 %v1919_v52 }
  0x92   : > { %1795 = vmatprep.subr.bf16.mxu0 %v1920_v54  ;;  %1830 = vmatpush3.bf16.msra.mxu1 %v1920_v54 }
  0x93   : > { %1823 = vmatprep.subr.bf16.mxu1 %v1921_v55 }
  0x94   : > { %1782 = vmatmul.mubr.bf16.gmra.mxu1 %v2276_v8 }
  0x95   : > { %1796 = vmatpush3.bf16.msra.mxu0 %v1920_v54 }
  0x96   : > { %1797 = vmatprep.subr.bf16.mxu0 %v1921_v55  ;;  %1831 = vmatpush3.bf16.msra.mxu1 %v1921_v55 }
  0x97   : > { %1824 = vmatprep.subr.bf16.mxu1 %v1922_v56 }
  0x98   : > { %1750 = vmatmul.mubr.bf16.gmra.mxu0 %v1906_v53 }
  0x99   : > { %1798 = vmatpush3.bf16.msra.mxu0 %v1921_v55 }
  0x9a   : > { %1799 = vmatprep.subr.bf16.mxu0 %v1922_v56  ;;  %1832 = vmatpush3.bf16.msra.mxu1 %v1922_v56 }
  0x9d   : > { %1800 = vmatpush3.bf16.msra.mxu0 %v1922_v56 }
  0xd6   : > { %v589_v57 = vpop.permute.xlu1 %588 }
  0xd7   : > { %v549_v58 = vpop.permute.xlu0 %548 }
  0xda   : > { %v594_v59 = vpop.permute.xlu1 %593 }
  0xdb   : > { %v554_v60 = vpop.permute.xlu0 %553 }
  0xde   : > { %v564_v61 = vpop.permute.xlu1 %563 }
  0xdf   : > { %v559_v62 = vpop.permute.xlu0 %558 }
  0xe2   : > { %v604_v63 = vpop.permute.xlu1 %603 }
  0xe3   : > { %v599_v0 = vpop.permute.xlu0 %598 }
  0xe6   : > { %v574_v2 = vpop.permute.xlu1 %573 }
  0xe7   : > { %v569_v4 = vpop.permute.xlu0 %568 }
  0xea   : > { %v614_v8 = vpop.permute.xlu1 %613 }
  0xeb   : > { %v609_v13 = vpop.permute.xlu0 %608 }
  0xee   : > { %v584_v18 = vpop.permute.xlu1 %583 }
  0xef   : > { %v579_v21 = vpop.permute.xlu0 %578 }
  0xf2   : > { %v624_v40 = vpop.permute.xlu1 %623 }
  0xf3   : > { %v619_v43 = vpop.permute.xlu0 %618 }
 0x13c   : > { %v1771_v49 = vpop.f32.mrf.mxu1 }
 0x13e   : > { %v764_v50 = vpop.f32.mrf.mxu1 }
 0x140   : > { %v1739_v1 = vpop.f32.mrf.mxu0  ;;  %v1772_v51 = vpop.f32.mrf.mxu1 }
 0x141   : > { %v628_v11 = vmul.f32 %v1739_v1, %v559_v62  ;;  %v2406_v62 = vld [vmem:[%s2245_s21] ss:$0 sm:$0xff] }
 0x142   : > { %v467_v3 = vpop.f32.mrf.mxu0  ;;  %v767_v52 = vpop.f32.mrf.mxu1 }
 0x143   : > { %v626_v9 = vmul.f32 %v549_v58, %v467_v3 }
 0x144   : > { %v1740_v5 = vpop.f32.mrf.mxu0  ;;  %v1775_v53 = vpop.f32.mrf.mxu1 }
 0x145   : > { %v629_v6 = vmul.f32 %v1740_v5, %v564_v61 }
 0x146   : > { %v470_v7 = vpop.f32.mrf.mxu0  ;;  %v780_v54 = vpop.f32.mrf.mxu1 }
 0x147   : > { %v627_v10 = vmul.f32 %v554_v60, %v470_v7  ;;  %v643_v15 = vpack.c.bf16 %v629_v6, %v628_v11 }
 0x148   : > { %v1743_v12 = vpop.f32.mrf.mxu0  ;;  %v1776_v55 = vpop.f32.mrf.mxu1 }
 0x149   : > { %v642_v14 = vpack.c.bf16 %v627_v10, %v626_v9  ;;  %v632_v24 = vmul.f32 %v1743_v12, %v579_v21 }
 0x14a   : > { %v483_v16 = vpop.f32.mrf.mxu0  ;;  %v783_v56 = vpop.f32.mrf.mxu1 }
 0x14b   : > { %1801 = vmatprep.mubr.bf16.mxu0 %v642_v14  ;;  %v630_v22 = vmul.f32 %v569_v4, %v483_v16 }
 0x14c   : > { %v1744_v17 = vpop.f32.mrf.mxu0  ;;  %1802 = vmatmul.mubr.bf16.vlgmr.msra.gmra.mxu0 %v643_v15 }
 0x14d   : > { %v633_v19 = vmul.f32 %v1744_v17, %v584_v18 }
 0x14e   : > { %v486_v20 = vpop.f32.mrf.mxu0 }
 0x14f   : > { %v631_v23 = vmul.f32 %v574_v2, %v486_v20  ;;  %v645_v27 = vpack.c.bf16 %v633_v19, %v632_v24 }
 0x150   : > { %v1747_v25 = vpop.f32.mrf.mxu0 }
 0x151   : > { %v644_v26 = vpack.c.bf16 %v631_v23, %v630_v22  ;;  %v636_v34 = vmul.f32 %v1747_v25, %v599_v0 }
 0x152   : > { %v499_v28 = vpop.f32.mrf.mxu0 }
 0x153   : > { %1805 = vmatprep.mubr.bf16.mxu0 %v644_v26  ;;  %v634_v32 = vmul.f32 %v589_v57, %v499_v28  ;;  %v1779_v57 = vpop.f32.mrf.mxu1 }
 0x154   : > { %v1748_v29 = vpop.f32.mrf.mxu0  ;;  %1806 = vmatmul.mubr.bf16.gmra.mxu0 %v645_v27 }
 0x155   : > { %v637_v30 = vmul.f32 %v1748_v29, %v604_v63  ;;  %v796_v58 = vpop.f32.mrf.mxu1 }
 0x156   : > { %v502_v31 = vpop.f32.mrf.mxu0 }
 0x157   : > { %v635_v33 = vmul.f32 %v594_v59, %v502_v31  ;;  %v647_v37 = vpack.c.bf16 %v637_v30, %v636_v34  ;;  %v1780_v59 = vpop.f32.mrf.mxu1 }
 0x158   : > { %v1751_v35 = vpop.f32.mrf.mxu0 }
 0x159   : > { %v646_v36 = vpack.c.bf16 %v635_v33, %v634_v32  ;;  %v640_v46 = vmul.f32 %v1751_v35, %v619_v43  ;;  %v799_v60 = vpop.f32.mrf.mxu1 }
 0x15a   : > { %v515_v38 = vpop.f32.mrf.mxu0 }
 0x15b   : > { %1809 = vmatprep.mubr.bf16.mxu1 %v646_v36  ;;  %v638_v44 = vmul.f32 %v609_v13, %v515_v38  ;;  %v1783_v0 = vpop.f32.mrf.mxu1 }
 0x15c   : > { %v1752_v39 = vpop.f32.mrf.mxu0  ;;  %1810 = vmatmul.mubr.bf16.vlgmr.msra.gmra.mxu1 %v647_v37 }
 0x15d   : > { %v641_v41 = vmul.f32 %v1752_v39, %v624_v40 }
 0x15e   : > { %v518_v42 = vpop.f32.mrf.mxu0 }
 0x15f   : > { %v639_v45 = vmul.f32 %v614_v8, %v518_v42  ;;  %v649_v48 = vpack.c.bf16 %v641_v41, %v640_v46  ;;  %v812_v8 = vpop.f32.mrf.mxu1 }
 0x161   : > { %v648_v47 = vpack.c.bf16 %v639_v45, %v638_v44  ;;  %v1784_v16 = vpop.f32.mrf.mxu1 }
 0x163   : > { %1813 = vmatprep.mubr.bf16.mxu1 %v648_v47  ;;  %v815_v24 = vpop.f32.mrf.mxu1 }
 0x164   : > { %1814 = vmatmul.mubr.bf16.gmra.mxu1 %v649_v48 }
 0x20c   : > { %v1803_v61 = vpop.f32.mrf.mxu0 }
 0x20d   : > { %v918_v63 = vadd.f32 %v1803_v61, %v1771_v49 }
 0x20e   : > { %v909_v1 = vpop.f32.mrf.mxu0 }
 0x20f   : > { %v2409_v2 = vadd.f32 %v2406_v62, %v918_v63  ;;  %v910_v3 = vadd.f32 %v909_v1, %v764_v50 }
 0x210   : > { %v1804_v4 = vpop.f32.mrf.mxu0 }
 0x211   : > { %v2412_v5 = vadd.f32 %v2406_v62, %v910_v3  ;;  %v921_v6 = vadd.f32 %v1804_v4, %v1772_v51  ;;  %v995_v7 = vmul.f32 %v2409_v2, %v2409_v2 }
 0x212   : > { %v912_v9 = vpop.f32.mrf.mxu0 }
 0x213   : > { %v913_v10 = vadd.f32 %v912_v9, %v767_v52  ;;  %1013 = vadd.xlane.f32.xlu0 %v995_v7  ;;  %v2417_v12 = vadd.f32 %v2406_v62, %v921_v6  ;;  %v993_v15 = vmul.f32 %v2412_v5, %v2412_v5 }
 0x214   : > { %v1807_v11 = vpop.f32.mrf.mxu0 }
 0x215   : > { %v2420_v13 = vadd.f32 %v2406_v62, %v913_v10  ;;  %v934_v14 = vadd.f32 %v1807_v11, %v1775_v53  ;;  %v996_v23 = vmul.f32 %v2417_v12, %v2417_v12 }
 0x216   : > { %v925_v17 = vpop.f32.mrf.mxu0 }
 0x217   : > { %v2425_v18 = vadd.f32 %v2406_v62, %v934_v14  ;;  %v926_v19 = vadd.f32 %v925_v17, %v780_v54  ;;  %1009 = vadd.xlane.f32.xlu0 %v993_v15  ;;  %v994_v20 = vmul.f32 %v2420_v13, %v2420_v13 }
 0x218   : > { %v1808_v21 = vpop.f32.mrf.mxu0 }
 0x219   : > { %v937_v22 = vadd.f32 %v1808_v21, %v1776_v55  ;;  %1011 = vadd.xlane.f32.xlu1 %v994_v20  ;;  %v2432_v26 = vadd.f32 %v2406_v62, %v926_v19  ;;  %v999_v29 = vmul.f32 %v2425_v18, %v2425_v18 }
 0x21a   : > { %v928_v25 = vpop.f32.mrf.mxu0 }
 0x21b   : > { %v2435_v27 = vadd.f32 %v2406_v62, %v937_v22  ;;  %v929_v28 = vadd.f32 %v928_v25, %v783_v56  ;;  %1015 = vadd.xlane.f32.xlu0 %v996_v23  ;;  %v997_v37 = vmul.f32 %v2432_v26, %v2432_v26 }
 0x21c   : > { %v1811_v30 = vpop.f32.mrf.mxu1 }
 0x21d   : > { %v2440_v31 = vadd.f32 %v2406_v62, %v929_v28  ;;  %v950_v32 = vadd.f32 %v1811_v30, %v1779_v57  ;;  %1021 = vadd.xlane.f32.xlu1 %v999_v29  ;;  %v1000_v33 = vmul.f32 %v2435_v27, %v2435_v27 }
 0x21e   : > { %v941_v34 = vpop.f32.mrf.mxu1 }
 0x21f   : > { %v2445_v35 = vadd.f32 %v2406_v62, %v950_v32  ;;  %v942_v36 = vadd.f32 %v941_v34, %v796_v58  ;;  %1023 = vadd.xlane.f32.xlu0 %v1000_v33  ;;  %v998_v40 = vmul.f32 %v2440_v31, %v2440_v31 }
 0x220   : > { %v1812_v38 = vpop.f32.mrf.mxu1 }
 0x221   : > { %v953_v39 = vadd.f32 %v1812_v38, %v1780_v59  ;;  %1017 = vadd.xlane.f32.xlu1 %v997_v37  ;;  %v2452_v42 = vadd.f32 %v2406_v62, %v942_v36  ;;  %v1003_v45 = vmul.f32 %v2445_v35, %v2445_v35 }
 0x222   : > { %v944_v41 = vpop.f32.mrf.mxu1 }
 0x223   : > { %v2455_v43 = vadd.f32 %v2406_v62, %v953_v39  ;;  %v945_v44 = vadd.f32 %v944_v41, %v799_v60  ;;  %1019 = vadd.xlane.f32.xlu0 %v998_v40  ;;  %v1001_v52 = vmul.f32 %v2452_v42, %v2452_v42 }
 0x224   : > { %v1815_v46 = vpop.f32.mrf.mxu1 }
 0x225   : > { %v2460_v47 = vadd.f32 %v2406_v62, %v945_v44  ;;  %1029 = vadd.xlane.f32.xlu1 %v1003_v45  ;;  %v1004_v48 = vmul.f32 %v2455_v43, %v2455_v43  ;;  %v966_v50 = vadd.f32 %v1815_v46, %v1783_v0 }
 0x226   : > { %v957_v49 = vpop.f32.mrf.mxu1 }
 0x227   : > { %v958_v51 = vadd.f32 %v957_v49, %v812_v8  ;;  %1031 = vadd.xlane.f32.xlu0 %v1004_v48  ;;  %v1002_v55 = vmul.f32 %v2460_v47, %v2460_v47  ;;  %v2472_v57 = vadd.f32 %v2406_v62, %v966_v50 }
 0x228   : > { %v1816_v53 = vpop.f32.mrf.mxu1 }
 0x229   : > { %v2467_v54 = vadd.f32 %v2406_v62, %v958_v51  ;;  %1025 = vadd.xlane.f32.xlu1 %v1001_v52  ;;  %v969_v58 = vadd.f32 %v1816_v53, %v1784_v16  ;;  %v1007_v1 = vmul.f32 %v2472_v57, %v2472_v57 }
 0x22a   : > { %v960_v56 = vpop.f32.mrf.mxu1 }
 0x22b   : > { %v961_v59 = vadd.f32 %v960_v56, %v815_v24  ;;  %1027 = vadd.xlane.f32.xlu0 %v1002_v55  ;;  %v1005_v60 = vmul.f32 %v2467_v54, %v2467_v54  ;;  %v2480_v63 = vadd.f32 %v2406_v62, %v969_v58 }
 0x22d   : > { %v2477_v61 = vadd.f32 %v2406_v62, %v961_v59  ;;  %1033 = vadd.xlane.f32.xlu1 %v1005_v60  ;;  %v1008_v3 = vmul.f32 %v2480_v63, %v2480_v63 }
 0x22f   : > { %v1006_v0 = vmul.f32 %v2477_v61, %v2477_v61 }
 0x231   : > { %1035 = vadd.xlane.f32.xlu0 %v1006_v0  ;;  %1037 = vadd.xlane.f32.xlu1 %v1007_v1 }
 0x235   : > { %1039 = vadd.xlane.f32.xlu0 %v1008_v3 }
 0x29c   : > { %v1014_v4 = vpop.xlane.xlu0 %1013 }
 0x29d   : > { %v1043_v6 = vmax.f32 %v1014_v4, 1e-24 }
 0x29f   : > { %1923 = vrsqrt.f32 %v1043_v6 }
 0x2a0   : > { %v1010_v7 = vpop.xlane.xlu0 %1009 }
 0x2a1   : > { %v1041_v8 = vmax.f32 %v1010_v7, 1e-24 }
 0x2a2   : > { %v1012_v9 = vpop.xlane.xlu1 %1011 }
 0x2a3   : > { %1925 = vrsqrt.f32 %v1041_v8  ;;  %v1042_v62 = vmax.f32 %v1012_v9, 1e-24 }
 0x2a4   : > { %v1016_v10 = vpop.xlane.xlu0 %1015 }
 0x2a5   : > { %1927 = vrsqrt.f32 %v1042_v62  ;;  %v1044_v11 = vmax.f32 %v1016_v10, 1e-24 }
 0x2a6   : > { %v1022_v14 = vpop.xlane.xlu1 %1021 }
 0x2a7   : > { %1929 = vrsqrt.f32 %v1044_v11  ;;  %v1047_v15 = vmax.f32 %v1022_v14, 1e-24 }
 0x2a8   : > { %v1024_v16 = vpop.xlane.xlu0 %1023 }
 0x2a9   : > { %1931 = vrsqrt.f32 %v1047_v15  ;;  %v1048_v17 = vmax.f32 %v1024_v16, 1e-24 }
 0x2aa   : > { %v1018_v19 = vpop.xlane.xlu1 %1017 }
 0x2ab   : > { %1933 = vrsqrt.f32 %v1048_v17  ;;  %v1045_v20 = vmax.f32 %v1018_v19, 1e-24 }
 0x2ac   : > { %v1924_v21 = vpop.eup %1923  ;;  %v1020_v22 = vpop.xlane.xlu0 %1019 }
 0x2ad   : > { %v2489_v23 = vmul.f32 %v1924_v21, %v2409_v2  ;;  %1935 = vrsqrt.f32 %v1045_v20  ;;  %v1046_v24 = vmax.f32 %v1020_v22, 1e-24 }
 0x2ae   : > { %v1030_v25 = vpop.xlane.xlu1 %1029 }
 0x2af   : > { %1937 = vrsqrt.f32 %v1046_v24  ;;  %v1051_v28 = vmax.f32 %v1030_v25, 1e-24 }
 0x2b0   : > { %v1926_v29 = vpop.eup %1925  ;;  %v1032_v30 = vpop.xlane.xlu0 %1031 }
 0x2b1   : > { %v2492_v32 = vmul.f32 %v1926_v29, %v2412_v5  ;;  %1939 = vrsqrt.f32 %v1051_v28  ;;  %v1052_v33 = vmax.f32 %v1032_v30, 1e-24 }
 0x2b2   : > { %v1928_v34 = vpop.eup %1927  ;;  %v1026_v36 = vpop.xlane.xlu1 %1025 }
 0x2b3   : > { %v2495_v37 = vmul.f32 %v1928_v34, %v2420_v13  ;;  %1941 = vrsqrt.f32 %v1052_v33  ;;  %v1049_v2 = vmax.f32 %v1026_v36, 1e-24 }
 0x2b4   : > { %v1930_v38 = vpop.eup %1929  ;;  %v1028_v39 = vpop.xlane.xlu0 %1027 }
 0x2b5   : > { %v2498_v40 = vmul.f32 %v1930_v38, %v2417_v12  ;;  %1943 = vrsqrt.f32 %v1049_v2  ;;  %v1050_v41 = vmax.f32 %v1028_v39, 1e-24 }
 0x2b6   : > { %v1932_v44 = vpop.eup %1931  ;;  %v1034_v45 = vpop.xlane.xlu1 %1033 }
 0x2b7   : > { %v2501_v5 = vmul.f32 %v1932_v44, %v2425_v18  ;;  %1945 = vrsqrt.f32 %v1050_v41  ;;  %v1053_v46 = vmax.f32 %v1034_v45, 1e-24 }
 0x2b8   : > { %v1934_v48 = vpop.eup %1933 }
 0x2b9   : > { %v2504_v13 = vmul.f32 %v1934_v48, %v2435_v27  ;;  %1947 = vrsqrt.f32 %v1053_v46 }
 0x2ba   : > { %v1936_v49 = vpop.eup %1935  ;;  %v1036_v50 = vpop.xlane.xlu0 %1035 }
 0x2bb   : > { %v1038_v51 = vpop.xlane.xlu1 %1037  ;;  %v2507_v12 = vmul.f32 %v1936_v49, %v2432_v26  ;;  %v1054_v52 = vmax.f32 %v1036_v50, 1e-24 }
 0x2bc   : > { %v1055_v53 = vmax.f32 %v1038_v51, 1e-24  ;;  %v1938_v55 = vpop.eup %1937 }
 0x2bd   : > { %v2510_v56 = vmul.f32 %v1938_v55, %v2440_v31  ;;  %1949 = vrsqrt.f32 %v1054_v52 }
 0x2be   : > { %v1940_v18 = vpop.eup %1939  ;;  %1951 = vrsqrt.f32 %v1055_v53  ;;  %v1040_v58 = vpop.xlane.xlu0 %1039 }
 0x2bf   : > { %v2513_v27 = vmul.f32 %v1940_v18, %v2445_v35  ;;  %v1056_v59 = vmax.f32 %v1040_v58, 1e-24 }
 0x2c0   : > { %v1942_v60 = vpop.eup %1941 }
 0x2c1   : > { %v2516_v0 = vmul.f32 %v1942_v60, %v2455_v43  ;;  %1953 = vrsqrt.f32 %v1056_v59 }
 0x2c2   : > { %v1944_v26 = vpop.eup %1943 }
 0x2c3   : > { %v2519_v1 = vmul.f32 %v1944_v26, %v2452_v42 }
 0x2c4   : > { %v1946_v3 = vpop.eup %1945 }
 0x2c5   : > { %v2522_v31 = vmul.f32 %v1946_v3, %v2460_v47 }
 0x2c6   : > { %v1948_v4 = vpop.eup %1947 }
 0x2c7   : > { %v2525_v6 = vmul.f32 %v1948_v4, %v2467_v54 }
 0x2ca   : > { %v1950_v35 = vpop.eup %1949 }
 0x2cb   : > { %v1952_v7 = vpop.eup %1951  ;;  %v2528_v8 = vmul.f32 %v1950_v35, %v2477_v61  ;;  %1092 = sbr.rel (%p1585_p8) target bundleno = 855 (0x357), region = 56 }
 0x2cc   : > { %v2531_v43 = vmul.f32 %v1952_v7, %v2472_v57 }
 0x2ce   : > { %v1954_v9 = vpop.eup %1953 }
 0x2cf   : > { %v2534_v42 = vmul.f32 %v1954_v9, %v2480_v63 }
 0x2d0   : > { %v1162_v47 = vmul.f32 0.0, %v2489_v23  ;;  %v1176_v54 = vadd.f32 %v2495_v37, %v2492_v32  ;;  %v1163_v62 = vmul.f32 0.0, %v2498_v40  ;;  %v1164_v61 = vmul.f32 0.0, %v2507_v12 }
 0x2d1   : > { %v1165_v57 = vmul.f32 0.0, %v2510_v56  ;;  %v1166_v14 = vmul.f32 0.0, %v2501_v5  ;;  %v1167_v15 = vmul.f32 0.0, %v2504_v13  ;;  %v1168_v17 = vmul.f32 0.0, %v2519_v1 }
 0x2d2   : > { %v1177_v10 = vadd.f32 %v1176_v54, %v1162_v47  ;;  %v1169_v20 = vmul.f32 0.0, %v2522_v31  ;;  %v1170_v22 = vmul.f32 0.0, %v2513_v27  ;;  %v1171_v25 = vmul.f32 0.0, %v2516_v0 }
 0x2d3   : > { %v1172_v29 = vmul.f32 0.0, %v2525_v6  ;;  %v1173_v33 = vmul.f32 0.0, %v2528_v8  ;;  %v1174_v36 = vmul.f32 0.0, %v2531_v43  ;;  %v1175_v38 = vmul.f32 0.0, %v2534_v42 }
 0x2d4   : > { %v1178_v11 = vadd.f32 %v1177_v10, %v1163_v62 }
 0x2d6   : > { %v1179_v63 = vadd.f32 %v1178_v11, %v1164_v61 }
 0x2d8   : > { %v1180_v16 = vadd.f32 %v1179_v63, %v1165_v57 }
 0x2da   : > { %v1181_v19 = vadd.f32 %v1180_v16, %v1166_v14 }
 0x2dc   : > { %v1182_v21 = vadd.f32 %v1181_v19, %v1167_v15 }
 0x2de   : > { %v1183_v24 = vadd.f32 %v1182_v21, %v1168_v17 }
 0x2e0   : > { %v1184_v28 = vadd.f32 %v1183_v24, %v1169_v20 }
 0x2e2   : > { %v1185_v30 = vadd.f32 %v1184_v28, %v1170_v22 }
 0x2e4   : > { %v1186_v34 = vadd.f32 %v1185_v30, %v1171_v25 }
 0x2e6   : > { %v1187_v2 = vadd.f32 %v1186_v34, %v1172_v29 }
 0x2e8   : > { %v1188_v39 = vadd.f32 %v1187_v2, %v1173_v33 }
 0x2ea   : > { %v1189_v41 = vadd.f32 %v1188_v39, %v1174_v36 }
 0x2ec   : > { %v1190_v44 = vadd.f32 %v1189_v41, %v1175_v38 }
 0x2ee   : > { %v1191_v45 = vrot.slane %v1190_v44, 4 }
 0x2f0   : > { %v1192_v46 = vadd.f32 %v1191_v45, %v1190_v44 }
 0x2f2   : > { %v1193_v48 = vrot.slane %v1192_v46, 2 }
 0x2f4   : > { %v1194_v49 = vadd.f32 %v1193_v48, %v1192_v46 }
 0x2f6   : > { %v1195_v50 = vrot.slane %v1194_v49, 1 }
 0x2f8   : > { %v1196_v51 = vadd.f32 %v1195_v50, %v1194_v49 }
 0x2fa   : > { %v1197_v52 = vmul.f32 0.0625, %v1196_v51 }
 0x2fc   : > { %v1200_v53 = vsub.f32 %v2489_v23, %v1197_v52  ;;  %v2555_v55 = vsub.f32 %v2492_v32, %v1197_v52  ;;  %v2558_v18 = vsub.f32 %v2495_v37, %v1197_v52  ;;  %v1201_v58 = vsub.f32 %v2498_v40, %v1197_v52 }
 0x2fd   : > { %v1202_v59 = vsub.f32 %v2507_v12, %v1197_v52  ;;  %v1203_v26 = vsub.f32 %v2510_v56, %v1197_v52  ;;  %v1204_v7 = vsub.f32 %v2501_v5, %v1197_v52  ;;  %v1205_v54 = vsub.f32 %v2504_v13, %v1197_v52 }
 0x2fe   : > { %v2562_v60 = vmul.f32 0.0, %v1200_v53  ;;  %v2565_v3 = vmul.f32 0.0, %v1201_v58  ;;  %v1230_v4 = vmul.f32 %v2555_v55, %v2555_v55  ;;  %v1231_v35 = vmul.f32 %v2558_v18, %v2558_v18 }
 0x2ff   : > { %v2572_v9 = vmul.f32 0.0, %v1202_v59  ;;  %v2577_v62 = vmul.f32 0.0, %v1203_v26  ;;  %v1206_v57 = vsub.f32 %v2519_v1, %v1197_v52  ;;  %v1220_v11 = vmul.f32 0.0, %v1204_v7 }
 0x300   : > { %v1232_v47 = vmul.f32 %v2562_v60, %v2562_v60  ;;  %v1233_v61 = vmul.f32 %v2565_v3, %v2565_v3  ;;  %v1246_v10 = vadd.f32 %v1231_v35, %v1230_v4  ;;  %v1207_v15 = vsub.f32 %v2522_v31, %v1197_v52 }
 0x301   : > { %v1234_v14 = vmul.f32 %v2572_v9, %v2572_v9  ;;  %v1221_v16 = vmul.f32 0.0, %v1205_v54  ;;  %v1235_v17 = vmul.f32 %v2577_v62, %v2577_v62  ;;  %v1208_v20 = vsub.f32 %v2513_v27, %v1197_v52 }
 0x302   : > { %v1247_v63 = vadd.f32 %v1246_v10, %v1232_v47  ;;  %v2588_v21 = vmul.f32 0.0, %v1206_v57  ;;  %v1236_v22 = vmul.f32 %v1220_v11, %v1220_v11  ;;  %v1209_v25 = vsub.f32 %v2516_v0, %v1197_v52 }
 0x303   : > { %v2591_v28 = vmul.f32 0.0, %v1207_v15  ;;  %v1237_v29 = vmul.f32 %v1221_v16, %v1221_v16  ;;  %v1210_v33 = vsub.f32 %v2525_v6, %v1197_v52  ;;  %v2594_v34 = vmul.f32 0.0, %v1208_v20 }
 0x304   : > { %v1248_v19 = vadd.f32 %v1247_v63, %v1233_v61  ;;  %v1238_v36 = vmul.f32 %v2588_v21, %v2588_v21  ;;  %v1211_v38 = vsub.f32 %v2528_v8, %v1197_v52  ;;  %v2599_v39 = vmul.f32 0.0, %v1209_v25 }
 0x305   : > { %v1239_v41 = vmul.f32 %v2591_v28, %v2591_v28  ;;  %v1212_v45 = vsub.f32 %v2531_v43, %v1197_v52  ;;  %v2604_v46 = vmul.f32 0.0, %v1210_v33  ;;  %v1240_v48 = vmul.f32 %v2594_v34, %v2594_v34 }
 0x306   : > { %v1249_v24 = vadd.f32 %v1248_v19, %v1234_v14  ;;  %v1213_v50 = vsub.f32 %v2534_v42, %v1197_v52  ;;  %v2609_v51 = vmul.f32 0.0, %v1211_v38  ;;  %v1241_v53 = vmul.f32 %v2599_v39, %v2599_v39 }
 0x307   : > { %v2613_v59 = vmul.f32 0.0, %v1212_v45  ;;  %v1242_v26 = vmul.f32 %v2604_v46, %v2604_v46 }
 0x308   : > { %v1250_v30 = vadd.f32 %v1249_v24, %v1235_v17  ;;  %v2617_v35 = vmul.f32 0.0, %v1213_v50  ;;  %v1243_v7 = vmul.f32 %v2609_v51, %v2609_v51 }
 0x309   : > { %v1244_v52 = vmul.f32 %v2613_v59, %v2613_v59 }
 0x30a   : > { %v1251_v2 = vadd.f32 %v1250_v30, %v1236_v22  ;;  %v1245_v61 = vmul.f32 %v2617_v35, %v2617_v35  ;;  %v2626_v30 = vld [vmem:[%s2245_s21 + $0x1] ss:$0 sm:$0xff] }
 0x30c   : > { %v1252_v44 = vadd.f32 %v1251_v2, %v1237_v29 }
 0x30e   : > { %v1253_v49 = vadd.f32 %v1252_v44, %v1238_v36 }
 0x310   : > { %v1254_v58 = vadd.f32 %v1253_v49, %v1239_v41  ;;  %v2633_v41 = vld [vmem:[%s2245_s21 + $0x2] ss:$0 sm:$0xff] }
 0x312   : > { %v1255_v4 = vadd.f32 %v1254_v58, %v1240_v48 }
 0x314   : > { %v1256_v47 = vadd.f32 %v1255_v4, %v1241_v53 }
 0x316   : > { %v1257_v54 = vadd.f32 %v1256_v47, %v1242_v26 }
 0x318   : > { %v1258_v10 = vadd.f32 %v1257_v54, %v1243_v7 }
 0x31a   : > { %v1259_v57 = vadd.f32 %v1258_v10, %v1244_v52 }
 0x31c   : > { %v1260_v14 = vadd.f32 %v1259_v57, %v1245_v61 }
 0x31e   : > { %v1261_v63 = vrot.slane %v1260_v14, 4 }
 0x320   : > { %v1262_v15 = vadd.f32 %v1261_v63, %v1260_v14 }
 0x322   : > { %v1263_v17 = vrot.slane %v1262_v15, 2 }
 0x324   : > { %v1264_v19 = vadd.f32 %v1263_v17, %v1262_v15 }
 0x326   : > { %v1265_v20 = vrot.slane %v1264_v19, 1 }
 0x328   : > { %v1266_v22 = vadd.f32 %v1265_v20, %v1264_v19 }
 0x32a   : > { %v1267_v24 = vmul.f32 0.0625, %v1266_v22 }
 0x32c   : > { %v1268_v25 = vadd.f32 1e-05, %v1267_v24 }
 0x32e   : > { %1955 = vrsqrt.f32 %v1268_v25 }
 0x33b   : > { %v1956_v29 = vpop.eup %1955 }
 0x33c   : > { %v1270_v33 = vmul.f32 %v1956_v29, %v2555_v55  ;;  %v1271_v36 = vmul.f32 %v1956_v29, %v2558_v18  ;;  %v1272_v2 = vmul.f32 %v1956_v29, %v2562_v60  ;;  %v1273_v38 = vmul.f32 %v1956_v29, %v2565_v3 }
 0x33d   : > { %v1274_v44 = vmul.f32 %v1956_v29, %v2572_v9  ;;  %v1275_v45 = vmul.f32 %v1956_v29, %v2577_v62  ;;  %v1276_v48 = vmul.f32 %v1956_v29, %v1220_v11  ;;  %v1277_v49 = vmul.f32 %v1956_v29, %v1221_v16 }
 0x33e   : > { %v1290_v50 = vmul.f32 %v2626_v30, %v1270_v33  ;;  %v1291_v53 = vmul.f32 %v2626_v30, %v1271_v36  ;;  %v1292_v55 = vmul.f32 %v2626_v30, %v1272_v2  ;;  %v1293_v18 = vmul.f32 %v2626_v30, %v1273_v38 }
 0x33f   : > { %v1294_v60 = vmul.f32 %v2626_v30, %v1274_v44  ;;  %v1295_v3 = vmul.f32 %v2626_v30, %v1275_v45  ;;  %v1296_v58 = vmul.f32 %v2626_v30, %v1276_v48  ;;  %v1297_v9 = vmul.f32 %v2626_v30, %v1277_v49 }
 0x340   : > { %v1310_v62 = vadd.f32 %v2633_v41, %v1290_v50  ;;  %v1311_v11 = vadd.f32 %v2633_v41, %v1291_v53  ;;  %v1312_v16 = vadd.f32 %v2633_v41, %v1292_v55  ;;  %v1313_v26 = vadd.f32 %v2633_v41, %v1293_v18 }
 0x341   : > { %v1314_v4 = vadd.f32 %v2633_v41, %v1294_v60  ;;  %v1315_v7 = vadd.f32 %v2633_v41, %v1295_v3  ;;  %v1316_v47 = vadd.f32 %v2633_v41, %v1296_v58  ;;  %v1317_v52 = vadd.f32 %v2633_v41, %v1297_v9 }
 0x342   : > { %v1326_v54 = vmax.f32 %v1310_v62, 0.0  ;;  %v1327_v61 = vmax.f32 %v1311_v11, 0.0  ;;  %v1328_v10 = vmax.f32 %v1312_v16, 0.0  ;;  %v1329_v57 = vmax.f32 %v1313_v26, 0.0 }
 0x343   : > { %v1330_v14 = vmax.f32 %v1314_v4, 0.0  ;;  %v1331_v63 = vmax.f32 %v1315_v7, 0.0  ;;  %v1332_v15 = vmax.f32 %v1316_v47, 0.0  ;;  %v1333_v17 = vmax.f32 %v1317_v52, 0.0 }
 0x344   : > { %v1629_v19 = vpack.c.bf16 %v1327_v61, %v1326_v54  ;;  %v1344_v20 = vmul.f32 0.0, %v1328_v10  ;;  %v1345_v22 = vmul.f32 0.0, %v1329_v57  ;;  %v1278_v24 = vmul.f32 %v1956_v29, %v2588_v21 }
 0x345   : > { %v1346_v25 = vmul.f32 0.0, %v1330_v14  ;;  %v1347_v33 = vmul.f32 0.0, %v1331_v63  ;;  %v1348_v36 = vmul.f32 0.0, %v1332_v15  ;;  %v1349_v2 = vmul.f32 0.0, %v1333_v17 }
 0x346   : > { %1630 = vst [vmem:[#allocation2] sm:$0xff] %v1629_v19   ;;  %v1634_v38 = vpack.c.bf16 %v1345_v22, %v1344_v20  ;;  %v1279_v44 = vmul.f32 %v1956_v29, %v2591_v28  ;;  %v1298_v45 = vmul.f32 %v2626_v30, %v1278_v24  ;;  %v1280_v48 = vmul.f32 %v1956_v29, %v2594_v34 }
 0x347   : > { %v1639_v49 = vpack.c.bf16 %v1347_v33, %v1346_v25  ;;  %v1644_v50 = vpack.c.bf16 %v1349_v2, %v1348_v36  ;;  %v1281_v53 = vmul.f32 %v1956_v29, %v2599_v39  ;;  %v1282_v55 = vmul.f32 %v1956_v29, %v2604_v46 }
 0x348   : > { %1666 = vst [vmem:[#allocation2 + $0x8] sm:$0xff] %v1634_v38   ;;  %v1299_v21 = vmul.f32 %v2626_v30, %v1279_v44  ;;  %v1318_v18 = vadd.f32 %v2633_v41, %v1298_v45  ;;  %v1300_v60 = vmul.f32 %v2626_v30, %v1280_v48  ;;  %v1283_v3 = vmul.f32 %v1956_v29, %v2609_v51 }
 0x349   : > { %1667 = vst [vmem:[#allocation2 + $0x10] sm:$0xff] %v1639_v49   ;;  %1668 = vst [vmem:[#allocation2 + $0x18] sm:$0xff] %v1644_v50   ;;  %v1301_v28 = vmul.f32 %v2626_v30, %v1281_v53  ;;  %v1302_v34 = vmul.f32 %v2626_v30, %v1282_v55  ;;  %v1284_v58 = vmul.f32 %v1956_v29, %v2613_v59 }
 0x34a   : > { %v1285_v39 = vmul.f32 %v1956_v29, %v2617_v35  ;;  %v1319_v46 = vadd.f32 %v2633_v41, %v1299_v21  ;;  %v1334_v9 = vmax.f32 %v1318_v18, 0.0  ;;  %v1320_v62 = vadd.f32 %v2633_v41, %v1300_v60 }
 0x34b   : > { %v1303_v11 = vmul.f32 %v2626_v30, %v1283_v3  ;;  %v1321_v16 = vadd.f32 %v2633_v41, %v1301_v28  ;;  %v1322_v51 = vadd.f32 %v2633_v41, %v1302_v34  ;;  %v1304_v26 = vmul.f32 %v2626_v30, %v1284_v58 }
 0x34c   : > { %v1305_v4 = vmul.f32 %v2626_v30, %v1285_v39  ;;  %v1335_v7 = vmax.f32 %v1319_v46, 0.0  ;;  %v1350_v47 = vmul.f32 0.0, %v1334_v9  ;;  %v1336_v59 = vmax.f32 %v1320_v62, 0.0 }
 0x34d   : > { %v1323_v35 = vadd.f32 %v2633_v41, %v1303_v11  ;;  %v1337_v29 = vmax.f32 %v1321_v16, 0.0  ;;  %v1338_v52 = vmax.f32 %v1322_v51, 0.0  ;;  %v1324_v54 = vadd.f32 %v2633_v41, %v1304_v26 }
 0x34e   : > { %v1325_v61 = vadd.f32 %v2633_v41, %v1305_v4  ;;  %v1351_v10 = vmul.f32 0.0, %v1335_v7  ;;  %v1352_v57 = vmul.f32 0.0, %v1336_v59 }
 0x34f   : > { %v1339_v14 = vmax.f32 %v1323_v35, 0.0  ;;  %v1353_v63 = vmul.f32 0.0, %v1337_v29  ;;  %v1354_v15 = vmul.f32 0.0, %v1338_v52  ;;  %v1340_v17 = vmax.f32 %v1324_v54, 0.0 }
 0x350   : > { %v1341_v19 = vmax.f32 %v1325_v61, 0.0  ;;  %v1649_v20 = vpack.c.bf16 %v1351_v10, %v1350_v47 }
 0x351   : > { %v1355_v30 = vmul.f32 0.0, %v1339_v14  ;;  %v1654_v22 = vpack.c.bf16 %v1353_v63, %v1352_v57  ;;  %v1356_v24 = vmul.f32 0.0, %v1340_v17 }
 0x352   : > { %v1357_v25 = vmul.f32 0.0, %v1341_v19  ;;  %1669 = vst [vmem:[#allocation2 + $0x20] sm:$0xff] %v1649_v20  }
 0x353   : > { %v1659_v33 = vpack.c.bf16 %v1355_v30, %v1354_v15  ;;  %1670 = vst [vmem:[#allocation2 + $0x28] sm:$0xff] %v1654_v22  }
 0x354   : > { %v1664_v36 = vpack.c.bf16 %v1357_v25, %v1356_v24 }
 0x355   : > { %1671 = vst [vmem:[#allocation2 + $0x30] sm:$0xff] %v1659_v33  }
 0x356   : > { %1672 = vst [vmem:[#allocation2 + $0x38] sm:$0xff] %v1664_v36  }
 0x357 PF: > { %p1604_p1 = scmp.ne.s32.totalorder %s2138_s22, 2 }
 0x359   : > { %1441 = sbr.rel (%p1604_p1) target bundleno = 870 (0x366), region = 60 }
 0x35e   : > { %1442 = vst [vmem:[#allocation8] sm:$0xff] %v2492_v32  ;;  %1443 = vst [vmem:[#allocation8 + $0x8] sm:$0xff] %v2495_v37 }
 0x35f   : > { %1444 = vst [vmem:[#allocation8 + $0x10] sm:$0xff] %v2489_v23  ;;  %1445 = vst [vmem:[#allocation8 + $0x18] sm:$0xff] %v2498_v40 }
 0x360   : > { %1446 = vst [vmem:[#allocation8 + $0x20] sm:$0xff] %v2507_v12  ;;  %1447 = vst [vmem:[#allocation8 + $0x28] sm:$0xff] %v2510_v56 }
 0x361   : > { %1448 = vst [vmem:[#allocation8 + $0x30] sm:$0xff] %v2501_v5  ;;  %1449 = vst [vmem:[#allocation8 + $0x38] sm:$0xff] %v2504_v13 }
 0x362   : > { %1450 = vst [vmem:[#allocation8 + $0x40] sm:$0xff] %v2519_v1  ;;  %1451 = vst [vmem:[#allocation8 + $0x48] sm:$0xff] %v2522_v31 }
 0x363   : > { %1452 = vst [vmem:[#allocation8 + $0x50] sm:$0xff] %v2513_v27  ;;  %1453 = vst [vmem:[#allocation8 + $0x58] sm:$0xff] %v2516_v0 }
 0x364   : > { %1454 = vst [vmem:[#allocation8 + $0x60] sm:$0xff] %v2525_v6  ;;  %1455 = vst [vmem:[#allocation8 + $0x68] sm:$0xff] %v2528_v8 }
 0x365   : > { %1456 = vst [vmem:[#allocation8 + $0x70] sm:$0xff] %v2531_v43  ;;  %1457 = vst [vmem:[#allocation8 + $0x78] sm:$0xff] %v2534_v42 }
 0x366 PF: > { %p1849_p5 = scmp.eq.s32.totalorder %s2138_s22, 2  ;;  %s2086_s18 = smov [#allocation8]  }
 0x367   : > { %s1464_s21 = sshll.u32 %s2086_s18, 4  ;;  %s1465_s21 = int_to_ptr.vmem [resolvable:$true] %s1464_s21 }
 0x368   : > { %s2013_s28 = scalar_lea.vmem %s1465_s21, 2048  ;;  %p2020_p0 = scmp.lt.s32.totalorder %s1465_s21, %s1465_s21 }
 0x369   : > { %p2014_p6 = scmp.ne.s32.totalorder %s1465_s21, %s2013_s28  ;;  %p2021_p13 = scmp.lt.s32.totalorder %s2013_s28, %s2013_s28 }
 0x36b   : > { %p2015_p10 = pnand %p2014_p6, %p1849_p5  ;;  %p2022_p9 = por %p2021_p13, %p2020_p0 }
 0x36d   : > { %p2016_p12 = pneg %p2015_p10 }
 0x36f   : > { %p2023_p2 = pnand %p2022_p9, %p2016_p12 }
 0x371   : > { %2026 = shalt.err (!%p2023_p2)
}
 0x372   : > { %s2087_s7 = smov 128   ;;  %s2088_s9 = smov 8  }
 0x373   : > { %1838 = dma.vmem_to_hbm [thread:$0]  (%p1849_p5), %s1465_s21, 2048, %s2724_s5, [#allocation5], %s2087_s7, %s2087_s7, %s2088_s9  }
 0x374   : > { %2062 = dma.done.wait (%p1849_p5), [#allocation5], 2048  }
 0x375   : > { %2064 = vsyncadd (%p1849_p5), [#allocation5], 4294965248 }
 0x376 PF: > { %p19_p3 = scmp.ge.s32.totalorder %s2141_s23, 5   ;;  %s2732_s18 = smov %s2071_s19 }
 0x377   : > { %s2733_s19 = smov %s2075_s20  ;;  %s2734_s20 = smov %s2151_s26 }
 0x378   : > { %s2735_s21 = smov %s2141_s23  ;;  %21 = sbr.rel (!%p19_p3) target bundleno = 6 (0x6), region = 102 }
 0x37d   :  { %1480 = vsyncpa [#allocation4], 1 }
 0x37e   :  { %1482 = vsyncpa [#allocation4 + $0x1], 1 }
 0x37f   :  { %1483 = vsyncpa [#allocation7], 1 }
 0x380   :  { %1485 = vsyncpa [#allocation7 + $0x1], 1 }
 0x381   :  { %1486 = vsyncpa [#allocation5], 1 }
 0x382   :  { %1488 = vsyncpa [#allocation5 + $0x1], 1 }

// kernel: tpu_custom_call.1
= control target key start
LH: loop header
LB: loop body
LE: loop exit
PB: predicated region body
PF: predicated region fallthrough
CT: control target
= control target key end

     0   :  { %10 = vsyncpa [#allocation4], 0  ;;  %s2719_s0 = inlined_call_operand.vmem [shape: bf16[128,128], index: 0, kind: input, shape index: {}]   ;;  %s2720_s1 = inlined_call_operand.vmem [shape: bf16[128,128], index: 1, kind: input, shape index: {}]   ;;  %s2721_s2 = inlined_call_operand.vmem [shape: f32[128,1], index: 2, kind: input, shape index: {}]   ;;  %s2722_s3 = inlined_call_operand.hbm [shape: bf16[3,256,128], index: 3, kind: input, shape index: {}]   ;;  %s2723_s4 = inlined_call_operand.hbm [shape: f32[3,8,128], index: 4, kind: input, shape index: {}]   ;;  %s2724_s5 = inlined_call_operand.hbm [shape: f32[128,128], index: 5, kind: output, shape index: {}]  }
   0x1   :  { %12 = vsyncpa [#allocation4 + $0x1], 0 }
   0x2   :  { %13 = vsyncpa [#allocation7], 0 }
   0x3   :  { %15 = vsyncpa [#allocation7 + $0x1], 0 }
   0x4   :  { %16 = vsyncpa [#allocation5], 0  ;;  %s2119_s18 = smov 0   ;;  %s2121_s19 = smov 0  }
   0x5   :  { %s2123_s20 = smov 0   ;;  %s2125_s21 = smov 0  }
   0x6 LB: > { %s2138_s22 = sadd.s32 4294967295, %s2079_s21   ;;  %s2141_s23 = sadd.s32 1, %s2079_s21   ;;  %s2079_s21 = sphi %s2125_s21, %s2735_s21   ;;  %s2075_s20 = sphi %s2123_s20, %s2734_s20   ;;  %s2071_s19 = sphi %s2121_s19, %s2733_s19   ;;  %s2067_s18 = sphi %s2119_s18, %s2732_s18  }
   0x7   : > { %s89_s24 = ssub.s32 %s2079_s21, %s2141_s23  ;;  %s92_s25 = sadd.s32 1, %s2075_s20 }
   0x8   : > { %p90_p0 = scmp.eq.s32.totalorder %s89_s24, 0  ;;  %p99_p1 = scmp.ne.s32.totalorder %s2075_s20, %s2071_s19 }
   0x9   : > { %p100_p2 = scmp.eq.s32.totalorder %s2079_s21, 0  ;;  %p105_p3 = scmp.ne.s32.totalorder %s2071_s19, %s2067_s18 }
   0xa   : > { %s2151_s26 = scalar_select %p90_p0, %s2075_s20, %s92_s25  }
   0xb   : > { %p101_p4 = por %p100_p2, %p99_p1  ;;  %p106_p5 = scmp.eq.s32.totalorder %s2138_s22, 0 }
   0xc   : > { %p1848_p6 = scmp.lt.s32.totalorder %s2079_s21, 3  ;;  %s2160_s28 = sand.u32 1, %s2075_s20  }
   0xd   : > { %p2155_p7 = por %p106_p5, %p105_p3  ;;  %s1543_s29 = sshll.u32 %s2160_s28, 7 }
   0xe   : > { %s1609_s30 = sshll.u32 %s2079_s21, 11  ;;  %s189_s9 = scalar_lea.vmem [#allocation3], %s1543_s29 }
   0xf   : > { %s2726_s27 = scalar_select %p2155_p7, 1, 0 }
  0x10   : > { %s2167_s8 = scalar_lea.hbm %s2722_s3, %s1609_s30  ;;  %s196_s10 = sshll.u32 %s189_s9, 4  ;;  %s2169_s10 = int_to_ptr.vmem [resolvable:$true] %s196_s10 }
  0x11   : > { %p2171_p8 = pnand %p1848_p6, %p101_p4  ;;  %s186_s12 = scalar_lea.sflag [#allocation4], %s2160_s28 }
  0x12   : > { %s1957_s13 = scalar_lea.hbm %s2167_s8, 2048  ;;  %s1962_s16 = scalar_lea.hbm %s2722_s3, 6144 }
  0x13   : > { %p1958_p10 = scmp.ne.s32.totalorder %s2167_s8, %s1957_s13  ;;  %p1959_p11 = pneg %p2171_p8 }
  0x14   : > { %p1963_p0 = scmp.lt.s32.totalorder %s2167_s8, %s2722_s3  ;;  %p1964_p1 = scmp.lt.s32.totalorder %s1962_s16, %s1957_s13 }
  0x15   : > { %p1960_p12 = pnand %p1959_p11, %p1958_p10 }
  0x16   : > { %p1965_p2 = por %p1964_p1, %p1963_p0 }
  0x17   : > { %p1961_p13 = pneg %p1960_p12 }
  0x19   : > { %p1966_p3 = pnand %p1965_p2, %p1961_p13 }
  0x1b   : > { %1969 = shalt.err (!%p1966_p3)
}
  0x1c   : > { %s1970_s24 = scalar_lea.vmem %s2169_s10, 2048  ;;  %s2081_s25 = smov [#allocation3]  }
  0x1d   : > { %p1971_p4 = scmp.ne.s32.totalorder %s2169_s10, %s1970_s24  ;;  %s1975_s29 = sshll.u32 %s2081_s25, 4  ;;  %s1976_s29 = int_to_ptr.vmem [resolvable:$false] %s1975_s29 }
  0x1e   : > { %s1977_s30 = scalar_lea.vmem %s1976_s29, 4096  ;;  %p1978_p10 = scmp.lt.s32.totalorder %s2169_s10, %s1976_s29 }
  0x1f   : > { %p1973_p5 = pnand %p1971_p4, %p1959_p11  ;;  %p1979_p12 = scmp.lt.s32.totalorder %s1977_s30, %s1970_s24 }
  0x21   : > { %p1974_p6 = pneg %p1973_p5  ;;  %p1980_p9 = por %p1979_p12, %p1978_p10 }
  0x23   : > { %p1981_p0 = pnand %p1980_p9, %p1974_p6 }
  0x25   : > { %1984 = shalt.err (!%p1981_p0)
}
  0x26   : > { %s2082_s6 = smov 64   ;;  %s2083_s7 = smov 4  }
  0x27   : > { %1844 = dma.hbm_to_vmem [thread:$0]  (!%p2171_p8), %s2167_s8, 2048, %s2169_s10, %s186_s12, %s2082_s6, %s2082_s6, %s2083_s7  }
  0x28   : > { %p222_p13 = scmp.lt.s32.totalorder %s2079_s21, 4  ;;  %s1546_s9 = sshll.u32 %s2160_s28, 3 }
  0x29   : > { %s1547_s13 = sshll.u32 %s2079_s21, 7  ;;  %p2728_p9 = scmp.ge.s32.totalorder %s2079_s21, 1 }
  0x2a   : > { %s2215_s17 = scalar_lea.hbm %s2723_s4, %s1547_s13  ;;  %s210_s18 = scalar_lea.vmem [#allocation6], %s1546_s9 }
  0x2b   : > { %p2208_p1 = pnand %p2728_p9, %p222_p13  ;;  %s217_s24 = sshll.u32 %s210_s18, 4  ;;  %s218_s24 = int_to_ptr.vmem [resolvable:$true] %s217_s24 }
  0x2c   : > { %s207_s8 = scalar_lea.sflag [#allocation7], %s2160_s28  ;;  %s1985_s10 = scalar_lea.hbm %s2215_s17, 128 }
  0x2d   : > { %s2729_s14 = scalar_select %p2208_p1, 1, 0 }
  0x2e   : > { %p1986_p2 = scmp.ne.s32.totalorder %s2215_s17, %s1985_s10  ;;  %s1990_s25 = scalar_lea.hbm %s2723_s4, 384 }
  0x2f   : > { %p1991_p5 = scmp.lt.s32.totalorder %s2215_s17, %s2723_s4  ;;  %p1992_p6 = scmp.lt.s32.totalorder %s1990_s25, %s1985_s10 }
  0x30   : > { %p1988_p3 = pnand %p1986_p2, %p1959_p11 }
  0x31   : > { %p1993_p10 = por %p1992_p6, %p1991_p5 }
  0x32   : > { %p1989_p4 = pneg %p1988_p3 }
  0x34   : > { %p1994_p12 = pnand %p1993_p10, %p1989_p4 }
  0x36   : > { %1997 = shalt.err (!%p1994_p12)
}
  0x37   : > { %s1998_s6 = scalar_lea.vmem %s218_s24, 128  ;;  %s2084_s28 = smov [#allocation6]  }
  0x38   : > { %p1999_p0 = scmp.ne.s32.totalorder %s218_s24, %s1998_s6  ;;  %s2003_s7 = sshll.u32 %s2084_s28, 4  ;;  %s2004_s7 = int_to_ptr.vmem [resolvable:$false] %s2003_s7 }
  0x39   : > { %s2005_s9 = scalar_lea.vmem %s2004_s7, 256  ;;  %p2006_p2 = scmp.lt.s32.totalorder %s218_s24, %s2004_s7 }
  0x3a   : > { %p2001_p13 = pnand %p1999_p0, %p1959_p11  ;;  %p2007_p3 = scmp.lt.s32.totalorder %s2005_s9, %s1998_s6 }
  0x3c   : > { %p2002_p9 = pneg %p2001_p13  ;;  %p2008_p7 = por %p2007_p3, %p2006_p2 }
  0x3e   : > { %p2009_p1 = pnand %p2008_p7, %p2002_p9 }
  0x40   : > { %2012 = shalt.err (!%p2009_p1)
}
  0x41   : > { %1847 = dma.hbm_to_vmem [thread:$0]  (!%p2171_p8), %s2215_s17, 128, %s218_s24, %s207_s8  }
  0x42   : > { %p2730_p4 = scmp.ne.s32.totalorder %s2729_s14, 0 }
  0x43   : > { %s228_s13 = sand.u32 (!%p2730_p4), 1, %s2071_s19   ;;  %p2731_p11 = scmp.ne.s32.totalorder (!%p2730_p4), %s2726_s27, 0 }
  0x44   : > { %226 = sbr.rel (%p2730_p4) target bundleno = 886 (0x376), region = 40  ;;  %s1549_s15 = sshll.u32 (!%p2730_p4), %s228_s13, 7 }
  0x45   : > { %s229_s16 = scalar_lea.sflag (!%p2730_p4), [#allocation4], %s228_s13  ;;  %s2239_s18 = scalar_lea.vmem (!%p2730_p4), [#allocation3], %s1549_s15 }
  0x49   : > { %2054 = dma.done.wait (%p2731_p11), %s229_s16, 2048  }
  0x4a   : > { %2056 = vsyncadd (%p2731_p11), %s229_s16, 4294965248  ;;  %s1550_s10 = sshll.u32 %s228_s13, 3  ;;  %s238_s11 = scalar_lea.sflag [#allocation7], %s228_s13 }
  0x4b   : > { %s2245_s21 = scalar_lea.vmem [#allocation6], %s1550_s10 }
  0x4c   : > { %2058 = dma.done.wait (%p2731_p11), %s238_s11, 128  }
  0x4d   : > { %2060 = vsyncadd (%p2731_p11), %s238_s11, 4294967168  ;;  %p1551_p7 = scmp.ne.s32.totalorder %s2138_s22, 0 }
  0x4f   : > { %272 = sbr.rel (%p1551_p7) target bundleno = 89 (0x59), region = 52 }
  0x54   : > { %v273_v0 = vld [vmem:[%s2720_s1] sm:$0xff]   ;;  %v275_v1 = vld [vmem:[%s2720_s1 + $0x8] sm:$0xff]   ;;  %v277_v2 = vld [vmem:[%s2720_s1 + $0x10] sm:$0xff]  }
  0x55   : > { %289 = vst [vmem:[#allocation2] sm:$0xff] %v273_v0   ;;  %291 = vst [vmem:[#allocation2 + $0x8] sm:$0xff] %v275_v1   ;;  %v279_v3 = vld [vmem:[%s2720_s1 + $0x18] sm:$0xff]   ;;  %v281_v4 = vld [vmem:[%s2720_s1 + $0x20] sm:$0xff]  }
  0x56   : > { %293 = vst [vmem:[#allocation2 + $0x10] sm:$0xff] %v277_v2   ;;  %v283_v5 = vld [vmem:[%s2720_s1 + $0x28] sm:$0xff]   ;;  %295 = vst [vmem:[#allocation2 + $0x18] sm:$0xff] %v279_v3   ;;  %v285_v6 = vld [vmem:[%s2720_s1 + $0x30] sm:$0xff]  }
  0x57   : > { %297 = vst [vmem:[#allocation2 + $0x20] sm:$0xff] %v281_v4   ;;  %299 = vst [vmem:[#allocation2 + $0x28] sm:$0xff] %v283_v5   ;;  %v287_v7 = vld [vmem:[%s2720_s1 + $0x38] sm:$0xff]  }
  0x58   : > { %301 = vst [vmem:[#allocation2 + $0x30] sm:$0xff] %v285_v6   ;;  %303 = vst [vmem:[#allocation2 + $0x38] sm:$0xff] %v287_v7  }
  0x59 PF: > { %v2085_v10 = vmov 0   ;;  %v1899_v14 = vld [vmem:[%s2719_s0] sm:$0xff]   ;;  %v539_v19 = vld [vmem:[%s2721_s2 + $0x48] sm:$0xff]  ;;  %v533_v22 = vld [vmem:[%s2721_s2 + $0x18] sm:$0xff]  ;;  %p1585_p8 = scmp.ge.s32.totalorder %s2138_s22, 2 }
  0x5a   : > { %1890 = vset.pattern.permute.xlu1 %v2085_v10  ;;  %1889 = vset.pattern.permute.xlu0 %v2085_v10  ;;  %v538_v17 = vld [vmem:[%s2721_s2 + $0x40] sm:$0xff]  ;;  %v531_v20 = vld [vmem:[%s2721_s2 + $0x8] sm:$0xff]  ;;  %v532_v23 = vld [vmem:[%s2721_s2 + $0x10] sm:$0xff] }
  0x5b   : > { %1737 = vmatprep.mubr.bf16.mxu0 %v1899_v14  ;;  %v530_v18 = vld [vmem:[%s2721_s2] sm:$0xff]  ;;  %588 = vperm.xlu1 %1890, %v538_v17   ;;  %v1907_v24 = vld [vmem:[%s2239_s18 + $0x78] sm:$0xff]   ;;  %v1908_v25 = vld [vmem:[%s2239_s18 + $0x70] sm:$0xff]  }
  0x5c   : > { %v1898_v13 = vld [vmem:[#allocation2] sm:$0xff]   ;;  %548 = vperm.xlu0 %1889, %v530_v18   ;;  %v2314_v21 = vld [vmem:[#allocation2 + $0x8] sm:$0xff]   ;;  %1753 = vmatprep.subr.bf16.mxu1 %v1907_v24  ;;  %v541_v26 = vld [vmem:[%s2721_s2 + $0x58] sm:$0xff] }
  0x5d   : > { %1769 = vmatprep.mubr.bf16.mxu1 %v1898_v13  ;;  %v2294_v15 = vld [vmem:[#allocation2 + $0x18] sm:$0xff]   ;;  %v2298_v16 = vld [vmem:[#allocation2 + $0x10] sm:$0xff]   ;;  %1754 = vmatpush3.bf16.msra.mxu1 %v1907_v24  ;;  %v1909_v28 = vld [vmem:[%s2239_s18 + $0x68] sm:$0xff]  }
  0x5e   : > { %v2283_v11 = vld [vmem:[#allocation2 + $0x28] sm:$0xff]   ;;  %v2285_v12 = vld [vmem:[#allocation2 + $0x20] sm:$0xff]   ;;  %v540_v27 = vld [vmem:[%s2721_s2 + $0x50] sm:$0xff]  ;;  %1755 = vmatprep.subr.bf16.mxu1 %v1908_v25 }
  0x5f   : > { %v2276_v8 = vld [vmem:[#allocation2 + $0x38] sm:$0xff]   ;;  %v2278_v9 = vld [vmem:[#allocation2 + $0x30] sm:$0xff]   ;;  %593 = vperm.xlu1 %1890, %v539_v19   ;;  %v1900_v29 = vld [vmem:[%s2719_s0 + $0x8] sm:$0xff]  }
  0x60   : > { %1721 = vmatprep.subr.bf16.mxu0 %v2276_v8  ;;  %553 = vperm.xlu0 %1889, %v531_v20   ;;  %v535_v30 = vld [vmem:[%s2721_s2 + $0x28] sm:$0xff]  ;;  %v2341_v31 = vld [vmem:[%s2239_s18 + $0x38] sm:$0xff]   ;;  %v1901_v32 = vld [vmem:[%s2719_s0 + $0x10] sm:$0xff]  }
  0x61   : > { %1722 = vmatpush3.bf16.msra.mxu0 %v2276_v8  ;;  %v534_v33 = vld [vmem:[%s2721_s2 + $0x20] sm:$0xff]  ;;  %1756 = vmatpush3.bf16.msra.mxu1 %v1908_v25  ;;  %v543_v35 = vld [vmem:[%s2721_s2 + $0x68] sm:$0xff]  ;;  %v1915_v37 = vld [vmem:[%s2239_s18 + $0x30] sm:$0xff]  }
  0x62   : > { %1723 = vmatprep.subr.bf16.mxu0 %v2278_v9  ;;  %v1910_v34 = vld [vmem:[%s2239_s18 + $0x60] sm:$0xff]   ;;  %1757 = vmatprep.subr.bf16.mxu1 %v1909_v28  ;;  %v1911_v38 = vld [vmem:[%s2239_s18 + $0x58] sm:$0xff]   ;;  %v536_v41 = vld [vmem:[%s2721_s2 + $0x30] sm:$0xff] }
  0x63   : > { %563 = vperm.xlu1 %1890, %v533_v22   ;;  %v542_v36 = vld [vmem:[%s2721_s2 + $0x60] sm:$0xff]  ;;  %v1902_v39 = vld [vmem:[%s2719_s0 + $0x18] sm:$0xff]   ;;  %v1912_v43 = vld [vmem:[%s2239_s18 + $0x50] sm:$0xff]  }
  0x64   : > { %558 = vperm.xlu0 %1889, %v532_v23   ;;  %v537_v40 = vld [vmem:[%s2721_s2 + $0x38] sm:$0xff]  ;;  %v1903_v42 = vld [vmem:[%s2719_s0 + $0x20] sm:$0xff]   ;;  %v1917_v44 = vld [vmem:[%s2239_s18 + $0x28] sm:$0xff]  }
  0x65   : > { %1724 = vmatpush3.bf16.msra.mxu0 %v2278_v9  ;;  %1758 = vmatpush3.bf16.msra.mxu1 %v1909_v28  ;;  %v545_v45 = vld [vmem:[%s2721_s2 + $0x78] sm:$0xff]  ;;  %v544_v46 = vld [vmem:[%s2721_s2 + $0x70] sm:$0xff]  ;;  %v1914_v47 = vld [vmem:[%s2239_s18 + $0x48] sm:$0xff]  }
  0x66   : > { %1725 = vmatprep.subr.bf16.mxu0 %v2283_v11  ;;  %1759 = vmatprep.subr.bf16.mxu1 %v1910_v34  ;;  %v1918_v48 = vld [vmem:[%s2239_s18 + $0x20] sm:$0xff]   ;;  %v1904_v49 = vld [vmem:[%s2719_s0 + $0x28] sm:$0xff]   ;;  %v1905_v50 = vld [vmem:[%s2719_s0 + $0x30] sm:$0xff]  }
  0x67   : > { %603 = vperm.xlu1 %1890, %v541_v26   ;;  %v1916_v51 = vld [vmem:[%s2239_s18 + $0x40] sm:$0xff]   ;;  %v1919_v52 = vld [vmem:[%s2239_s18 + $0x18] sm:$0xff]   ;;  %v1920_v54 = vld [vmem:[%s2239_s18 + $0x10] sm:$0xff]  }
  0x68   : > { %598 = vperm.xlu0 %1889, %v540_v27   ;;  %v1906_v53 = vld [vmem:[%s2719_s0 + $0x38] sm:$0xff]   ;;  %v1921_v55 = vld [vmem:[%s2239_s18 + $0x8] sm:$0xff]   ;;  %v1922_v56 = vld [vmem:[%s2239_s18] sm:$0xff]  }
  0x69   : > { %1726 = vmatpush3.bf16.msra.mxu0 %v2283_v11  ;;  %1760 = vmatpush3.bf16.msra.mxu1 %v1910_v34 }
  0x6a   : > { %1727 = vmatprep.subr.bf16.mxu0 %v2285_v12  ;;  %1761 = vmatprep.subr.bf16.mxu1 %v1911_v38 }
  0x6b   : > { %573 = vperm.xlu1 %1890, %v535_v30  }
  0x6c   : > { %568 = vperm.xlu0 %1889, %v534_v33  }
  0x6d   : > { %1728 = vmatpush3.bf16.msra.mxu0 %v2285_v12  ;;  %1762 = vmatpush3.bf16.msra.mxu1 %v1911_v38 }
  0x6e   : > { %1729 = vmatprep.subr.bf16.mxu0 %v2294_v15  ;;  %1763 = vmatprep.subr.bf16.mxu1 %v1912_v43 }
  0x6f   : > { %613 = vperm.xlu1 %1890, %v543_v35  }
  0x70   : > { %608 = vperm.xlu0 %1889, %v542_v36  }
  0x71   : > { %1730 = vmatpush3.bf16.msra.mxu0 %v2294_v15  ;;  %1764 = vmatpush3.bf16.msra.mxu1 %v1912_v43 }
  0x72   : > { %1731 = vmatprep.subr.bf16.mxu0 %v2298_v16  ;;  %1765 = vmatprep.subr.bf16.mxu1 %v1914_v47 }
  0x73   : > { %583 = vperm.xlu1 %1890, %v537_v40  }
  0x74   : > { %578 = vperm.xlu0 %1889, %v536_v41  }
  0x75   : > { %1732 = vmatpush3.bf16.msra.mxu0 %v2298_v16  ;;  %1766 = vmatpush3.bf16.msra.mxu1 %v1914_v47 }
  0x76   : > { %1733 = vmatprep.subr.bf16.mxu0 %v2314_v21  ;;  %1767 = vmatprep.subr.bf16.mxu1 %v1916_v51 }
  0x77   : > { %623 = vperm.xlu1 %1890, %v545_v45  }
  0x78   : > { %618 = vperm.xlu0 %1889, %v544_v46  }
  0x79   : > { %1734 = vmatpush3.bf16.msra.mxu0 %v2314_v21  ;;  %1768 = vmatpush3.bf16.msra.mxu1 %v1916_v51 }
  0x7a   : > { %1735 = vmatprep.subr.bf16.mxu0 %v1898_v13  ;;  %1817 = vmatprep.subr.bf16.mxu1 %v2341_v31 }
  0x7c   : > { %1770 = vmatmul.mubr.bf16.vlgmr.msra.gmra.mxu1 %v2314_v21 }
  0x7d   : > { %1736 = vmatpush3.bf16.msra.mxu0 %v1898_v13  ;;  %1825 = vmatpush3.bf16.msra.mxu1 %v2341_v31 }
  0x7e   : > { %1785 = vmatprep.subr.bf16.mxu0 %v2341_v31  ;;  %1773 = vmatprep.mubr.bf16.mxu1 %v2298_v16 }
  0x7f   : > { %1818 = vmatprep.subr.bf16.mxu1 %v1915_v37 }
  0x80   : > { %1738 = vmatmul.mubr.bf16.vlgmr.msra.gmra.mxu0 %v1900_v29 }
  0x81   : > { %1741 = vmatprep.mubr.bf16.mxu0 %v1901_v32  ;;  %1786 = vmatpush3.bf16.msra.mxu0 %v2341_v31 }
  0x82   : > { %1787 = vmatprep.subr.bf16.mxu0 %v1915_v37  ;;  %1826 = vmatpush3.bf16.msra.mxu1 %v1915_v37 }
  0x83   : > { %1819 = vmatprep.subr.bf16.mxu1 %v1917_v44 }
  0x84   : > { %1774 = vmatmul.mubr.bf16.gmra.mxu1 %v2294_v15 }
  0x85   : > { %1788 = vmatpush3.bf16.msra.mxu0 %v1915_v37  ;;  %1777 = vmatprep.mubr.bf16.mxu1 %v2285_v12 }
  0x86   : > { %1789 = vmatprep.subr.bf16.mxu0 %v1917_v44  ;;  %1827 = vmatpush3.bf16.msra.mxu1 %v1917_v44 }
  0x87   : > { %1820 = vmatprep.subr.bf16.mxu1 %v1918_v48 }
  0x88   : > { %1742 = vmatmul.mubr.bf16.gmra.mxu0 %v1902_v39 }
  0x89   : > { %1745 = vmatprep.mubr.bf16.mxu0 %v1903_v42  ;;  %1790 = vmatpush3.bf16.msra.mxu0 %v1917_v44 }
  0x8a   : > { %1791 = vmatprep.subr.bf16.mxu0 %v1918_v48  ;;  %1828 = vmatpush3.bf16.msra.mxu1 %v1918_v48 }
  0x8b   : > { %1821 = vmatprep.subr.bf16.mxu1 %v1919_v52 }
  0x8c   : > { %1778 = vmatmul.mubr.bf16.gmra.mxu1 %v2283_v11 }
  0x8d   : > { %1792 = vmatpush3.bf16.msra.mxu0 %v1918_v48  ;;  %1781 = vmatprep.mubr.bf16.mxu1 %v2278_v9 }
  0x8e   : > { %1793 = vmatprep.subr.bf16.mxu0 %v1919_v52  ;;  %1829 = vmatpush3.bf16.msra.mxu1 %v1919_v52 }
  0x8f   : > { %1822 = vmatprep.subr.bf16.mxu1 %v1920_v54 }
  0x90   : > { %1746 = vmatmul.mubr.bf16.gmra.mxu0 %v1904_v49 }
  0x91   : > { %1749 = vmatprep.mubr.bf16.mxu0 %v1905_v50  ;;  %1794 = vmatpush3.bf16.msra.mxu0 %v1919_v52 }
  0x92   : > { %1795 = vmatprep.subr.bf16.mxu0 %v1920_v54  ;;  %1830 = vmatpush3.bf16.msra.mxu1 %v1920_v54 }
  0x93   : > { %1823 = vmatprep.subr.bf16.mxu1 %v1921_v55 }
  0x94   : > { %1782 = vmatmul.mubr.bf16.gmra.mxu1 %v2276_v8 }
  0x95   : > { %1796 = vmatpush3.bf16.msra.mxu0 %v1920_v54 }
  0x96   : > { %1797 = vmatprep.subr.bf16.mxu0 %v1921_v55  ;;  %1831 = vmatpush3.bf16.msra.mxu1 %v1921_v55 }
  0x97   : > { %1824 = vmatprep.subr.bf16.mxu1 %v1922_v56 }
  0x98   : > { %1750 = vmatmul.mubr.bf16.gmra.mxu0 %v1906_v53 }
  0x99   : > { %1798 = vmatpush3.bf16.msra.mxu0 %v1921_v55 }
  0x9a   : > { %1799 = vmatprep.subr.bf16.mxu0 %v1922_v56  ;;  %1832 = vmatpush3.bf16.msra.mxu1 %v1922_v56 }
  0x9d   : > { %1800 = vmatpush3.bf16.msra.mxu0 %v1922_v56 }
  0xd6   : > { %v589_v57 = vpop.permute.xlu1 %588 }
  0xd7   : > { %v549_v58 = vpop.permute.xlu0 %548 }
  0xda   : > { %v594_v59 = vpop.permute.xlu1 %593 }
  0xdb   : > { %v554_v60 = vpop.permute.xlu0 %553 }
  0xde   : > { %v564_v61 = vpop.permute.xlu1 %563 }
  0xdf   : > { %v559_v62 = vpop.permute.xlu0 %558 }
  0xe2   : > { %v604_v63 = vpop.permute.xlu1 %603 }
  0xe3   : > { %v599_v0 = vpop.permute.xlu0 %598 }
  0xe6   : > { %v574_v2 = vpop.permute.xlu1 %573 }
  0xe7   : > { %v569_v4 = vpop.permute.xlu0 %568 }
  0xea   : > { %v614_v8 = vpop.permute.xlu1 %613 }
  0xeb   : > { %v609_v13 = vpop.permute.xlu0 %608 }
  0xee   : > { %v584_v18 = vpop.permute.xlu1 %583 }
  0xef   : > { %v579_v21 = vpop.permute.xlu0 %578 }
  0xf2   : > { %v624_v40 = vpop.permute.xlu1 %623 }
  0xf3   : > { %v619_v43 = vpop.permute.xlu0 %618 }
 0x13c   : > { %v1771_v49 = vpop.f32.mrf.mxu1 }
 0x13e   : > { %v764_v50 = vpop.f32.mrf.mxu1 }
 0x140   : > { %v1739_v1 = vpop.f32.mrf.mxu0  ;;  %v1772_v51 = vpop.f32.mrf.mxu1 }
 0x141   : > { %v628_v11 = vmul.f32 %v1739_v1, %v559_v62  ;;  %v2406_v62 = vld [vmem:[%s2245_s21] ss:$0 sm:$0xff] }
 0x142   : > { %v467_v3 = vpop.f32.mrf.mxu0  ;;  %v767_v52 = vpop.f32.mrf.mxu1 }
 0x143   : > { %v626_v9 = vmul.f32 %v549_v58, %v467_v3 }
 0x144   : > { %v1740_v5 = vpop.f32.mrf.mxu0  ;;  %v1775_v53 = vpop.f32.mrf.mxu1 }
 0x145   : > { %v629_v6 = vmul.f32 %v1740_v5, %v564_v61 }
 0x146   : > { %v470_v7 = vpop.f32.mrf.mxu0  ;;  %v780_v54 = vpop.f32.mrf.mxu1 }
 0x147   : > { %v627_v10 = vmul.f32 %v554_v60, %v470_v7  ;;  %v643_v15 = vpack.c.bf16 %v629_v6, %v628_v11 }
 0x148   : > { %v1743_v12 = vpop.f32.mrf.mxu0  ;;  %v1776_v55 = vpop.f32.mrf.mxu1 }
 0x149   : > { %v642_v14 = vpack.c.bf16 %v627_v10, %v626_v9  ;;  %v632_v24 = vmul.f32 %v1743_v12, %v579_v21 }
 0x14a   : > { %v483_v16 = vpop.f32.mrf.mxu0  ;;  %v783_v56 = vpop.f32.mrf.mxu1 }
 0x14b   : > { %1801 = vmatprep.mubr.bf16.mxu0 %v642_v14  ;;  %v630_v22 = vmul.f32 %v569_v4, %v483_v16 }
 0x14c   : > { %v1744_v17 = vpop.f32.mrf.mxu0  ;;  %1802 = vmatmul.mubr.bf16.vlgmr.msra.gmra.mxu0 %v643_v15 }
 0x14d   : > { %v633_v19 = vmul.f32 %v1744_v17, %v584_v18 }
 0x14e   : > { %v486_v20 = vpop.f32.mrf.mxu0 }
 0x14f   : > { %v631_v23 = vmul.f32 %v574_v2, %v486_v20  ;;  %v645_v27 = vpack.c.bf16 %v633_v19, %v632_v24 }
 0x150   : > { %v1747_v25 = vpop.f32.mrf.mxu0 }
 0x151   : > { %v644_v26 = vpack.c.bf16 %v631_v23, %v630_v22  ;;  %v636_v34 = vmul.f32 %v1747_v25, %v599_v0 }
 0x152   : > { %v499_v28 = vpop.f32.mrf.mxu0 }
 0x153   : > { %1805 = vmatprep.mubr.bf16.mxu0 %v644_v26  ;;  %v634_v32 = vmul.f32 %v589_v57, %v499_v28  ;;  %v1779_v57 = vpop.f32.mrf.mxu1 }
 0x154   : > { %v1748_v29 = vpop.f32.mrf.mxu0  ;;  %1806 = vmatmul.mubr.bf16.gmra.mxu0 %v645_v27 }
 0x155   : > { %v637_v30 = vmul.f32 %v1748_v29, %v604_v63  ;;  %v796_v58 = vpop.f32.mrf.mxu1 }
 0x156   : > { %v502_v31 = vpop.f32.mrf.mxu0 }
 0x157   : > { %v635_v33 = vmul.f32 %v594_v59, %v502_v31  ;;  %v647_v37 = vpack.c.bf16 %v637_v30, %v636_v34  ;;  %v1780_v59 = vpop.f32.mrf.mxu1 }
 0x158   : > { %v1751_v35 = vpop.f32.mrf.mxu0 }
 0x159   : > { %v646_v36 = vpack.c.bf16 %v635_v33, %v634_v32  ;;  %v640_v46 = vmul.f32 %v1751_v35, %v619_v43  ;;  %v799_v60 = vpop.f32.mrf.mxu1 }
 0x15a   : > { %v515_v38 = vpop.f32.mrf.mxu0 }
 0x15b   : > { %1809 = vmatprep.mubr.bf16.mxu1 %v646_v36  ;;  %v638_v44 = vmul.f32 %v609_v13, %v515_v38  ;;  %v1783_v0 = vpop.f32.mrf.mxu1 }
 0x15c   : > { %v1752_v39 = vpop.f32.mrf.mxu0  ;;  %1810 = vmatmul.mubr.bf16.vlgmr.msra.gmra.mxu1 %v647_v37 }
 0x15d   : > { %v641_v41 = vmul.f32 %v1752_v39, %v624_v40 }
 0x15e   : > { %v518_v42 = vpop.f32.mrf.mxu0 }
 0x15f   : > { %v639_v45 = vmul.f32 %v614_v8, %v518_v42  ;;  %v649_v48 = vpack.c.bf16 %v641_v41, %v640_v46  ;;  %v812_v8 = vpop.f32.mrf.mxu1 }
 0x161   : > { %v648_v47 = vpack.c.bf16 %v639_v45, %v638_v44  ;;  %v1784_v16 = vpop.f32.mrf.mxu1 }
 0x163   : > { %1813 = vmatprep.mubr.bf16.mxu1 %v648_v47  ;;  %v815_v24 = vpop.f32.mrf.mxu1 }
 0x164   : > { %1814 = vmatmul.mubr.bf16.gmra.mxu1 %v649_v48 }
 0x20c   : > { %v1803_v61 = vpop.f32.mrf.mxu0 }
 0x20d   : > { %v918_v63 = vadd.f32 %v1803_v61, %v1771_v49 }
 0x20e   : > { %v909_v1 = vpop.f32.mrf.mxu0 }
 0x20f   : > { %v2409_v2 = vadd.f32 %v2406_v62, %v918_v63  ;;  %v910_v3 = vadd.f32 %v909_v1, %v764_v50 }
 0x210   : > { %v1804_v4 = vpop.f32.mrf.mxu0 }
 0x211   : > { %v2412_v5 = vadd.f32 %v2406_v62, %v910_v3  ;;  %v921_v6 = vadd.f32 %v1804_v4, %v1772_v51  ;;  %v995_v7 = vmul.f32 %v2409_v2, %v2409_v2 }
 0x212   : > { %v912_v9 = vpop.f32.mrf.mxu0 }
 0x213   : > { %v913_v10 = vadd.f32 %v912_v9, %v767_v52  ;;  %1013 = vadd.xlane.f32.xlu0 %v995_v7  ;;  %v2417_v12 = vadd.f32 %v2406_v62, %v921_v6  ;;  %v993_v15 = vmul.f32 %v2412_v5, %v2412_v5 }
 0x214   : > { %v1807_v11 = vpop.f32.mrf.mxu0 }
 0x215   : > { %v2420_v13 = vadd.f32 %v2406_v62, %v913_v10  ;;  %v934_v14 = vadd.f32 %v1807_v11, %v1775_v53  ;;  %v996_v23 = vmul.f32 %v2417_v12, %v2417_v12 }
 0x216   : > { %v925_v17 = vpop.f32.mrf.mxu0 }
 0x217   : > { %v2425_v18 = vadd.f32 %v2406_v62, %v934_v14  ;;  %v926_v19 = vadd.f32 %v925_v17, %v780_v54  ;;  %1009 = vadd.xlane.f32.xlu0 %v993_v15  ;;  %v994_v20 = vmul.f32 %v2420_v13, %v2420_v13 }
 0x218   : > { %v1808_v21 = vpop.f32.mrf.mxu0 }
 0x219   : > { %v937_v22 = vadd.f32 %v1808_v21, %v1776_v55  ;;  %1011 = vadd.xlane.f32.xlu1 %v994_v20  ;;  %v2432_v26 = vadd.f32 %v2406_v62, %v926_v19  ;;  %v999_v29 = vmul.f32 %v2425_v18, %v2425_v18 }
 0x21a   : > { %v928_v25 = vpop.f32.mrf.mxu0 }
 0x21b   : > { %v2435_v27 = vadd.f32 %v2406_v62, %v937_v22  ;;  %v929_v28 = vadd.f32 %v928_v25, %v783_v56  ;;  %1015 = vadd.xlane.f32.xlu0 %v996_v23  ;;  %v997_v37 = vmul.f32 %v2432_v26, %v2432_v26 }
 0x21c   : > { %v1811_v30 = vpop.f32.mrf.mxu1 }
 0x21d   : > { %v2440_v31 = vadd.f32 %v2406_v62, %v929_v28  ;;  %v950_v32 = vadd.f32 %v1811_v30, %v1779_v57  ;;  %1021 = vadd.xlane.f32.xlu1 %v999_v29  ;;  %v1000_v33 = vmul.f32 %v2435_v27, %v2435_v27 }
 0x21e   : > { %v941_v34 = vpop.f32.mrf.mxu1 }
 0x21f   : > { %v2445_v35 = vadd.f32 %v2406_v62, %v950_v32  ;;  %v942_v36 = vadd.f32 %v941_v34, %v796_v58  ;;  %1023 = vadd.xlane.f32.xlu0 %v1000_v33  ;;  %v998_v40 = vmul.f32 %v2440_v31, %v2440_v31 }
 0x220   : > { %v1812_v38 = vpop.f32.mrf.mxu1 }
 0x221   : > { %v953_v39 = vadd.f32 %v1812_v38, %v1780_v59  ;;  %1017 = vadd.xlane.f32.xlu1 %v997_v37  ;;  %v2452_v42 = vadd.f32 %v2406_v62, %v942_v36  ;;  %v1003_v45 = vmul.f32 %v2445_v35, %v2445_v35 }
 0x222   : > { %v944_v41 = vpop.f32.mrf.mxu1 }
 0x223   : > { %v2455_v43 = vadd.f32 %v2406_v62, %v953_v39  ;;  %v945_v44 = vadd.f32 %v944_v41, %v799_v60  ;;  %1019 = vadd.xlane.f32.xlu0 %v998_v40  ;;  %v1001_v52 = vmul.f32 %v2452_v42, %v2452_v42 }
 0x224   : > { %v1815_v46 = vpop.f32.mrf.mxu1 }
 0x225   : > { %v2460_v47 = vadd.f32 %v2406_v62, %v945_v44  ;;  %1029 = vadd.xlane.f32.xlu1 %v1003_v45  ;;  %v1004_v48 = vmul.f32 %v2455_v43, %v2455_v43  ;;  %v966_v50 = vadd.f32 %v1815_v46, %v1783_v0 }
 0x226   : > { %v957_v49 = vpop.f32.mrf.mxu1 }
 0x227   : > { %v958_v51 = vadd.f32 %v957_v49, %v812_v8  ;;  %1031 = vadd.xlane.f32.xlu0 %v1004_v48  ;;  %v1002_v55 = vmul.f32 %v2460_v47, %v2460_v47  ;;  %v2472_v57 = vadd.f32 %v2406_v62, %v966_v50 }
 0x228   : > { %v1816_v53 = vpop.f32.mrf.mxu1 }
 0x229   : > { %v2467_v54 = vadd.f32 %v2406_v62, %v958_v51  ;;  %1025 = vadd.xlane.f32.xlu1 %v1001_v52  ;;  %v969_v58 = vadd.f32 %v1816_v53, %v1784_v16  ;;  %v1007_v1 = vmul.f32 %v2472_v57, %v2472_v57 }
 0x22a   : > { %v960_v56 = vpop.f32.mrf.mxu1 }
 0x22b   : > { %v961_v59 = vadd.f32 %v960_v56, %v815_v24  ;;  %1027 = vadd.xlane.f32.xlu0 %v1002_v55  ;;  %v1005_v60 = vmul.f32 %v2467_v54, %v2467_v54  ;;  %v2480_v63 = vadd.f32 %v2406_v62, %v969_v58 }
 0x22d   : > { %v2477_v61 = vadd.f32 %v2406_v62, %v961_v59  ;;  %1033 = vadd.xlane.f32.xlu1 %v1005_v60  ;;  %v1008_v3 = vmul.f32 %v2480_v63, %v2480_v63 }
 0x22f   : > { %v1006_v0 = vmul.f32 %v2477_v61, %v2477_v61 }
 0x231   : > { %1035 = vadd.xlane.f32.xlu0 %v1006_v0  ;;  %1037 = vadd.xlane.f32.xlu1 %v1007_v1 }
 0x235   : > { %1039 = vadd.xlane.f32.xlu0 %v1008_v3 }
 0x29c   : > { %v1014_v4 = vpop.xlane.xlu0 %1013 }
 0x29d   : > { %v1043_v6 = vmax.f32 %v1014_v4, 1e-24 }
 0x29f   : > { %1923 = vrsqrt.f32 %v1043_v6 }
 0x2a0   : > { %v1010_v7 = vpop.xlane.xlu0 %1009 }
 0x2a1   : > { %v1041_v8 = vmax.f32 %v1010_v7, 1e-24 }
 0x2a2   : > { %v1012_v9 = vpop.xlane.xlu1 %1011 }
 0x2a3   : > { %1925 = vrsqrt.f32 %v1041_v8  ;;  %v1042_v62 = vmax.f32 %v1012_v9, 1e-24 }
 0x2a4   : > { %v1016_v10 = vpop.xlane.xlu0 %1015 }
 0x2a5   : > { %1927 = vrsqrt.f32 %v1042_v62  ;;  %v1044_v11 = vmax.f32 %v1016_v10, 1e-24 }
 0x2a6   : > { %v1022_v14 = vpop.xlane.xlu1 %1021 }
 0x2a7   : > { %1929 = vrsqrt.f32 %v1044_v11  ;;  %v1047_v15 = vmax.f32 %v1022_v14, 1e-24 }
 0x2a8   : > { %v1024_v16 = vpop.xlane.xlu0 %1023 }
 0x2a9   : > { %1931 = vrsqrt.f32 %v1047_v15  ;;  %v1048_v17 = vmax.f32 %v1024_v16, 1e-24 }
 0x2aa   : > { %v1018_v19 = vpop.xlane.xlu1 %1017 }
 0x2ab   : > { %1933 = vrsqrt.f32 %v1048_v17  ;;  %v1045_v20 = vmax.f32 %v1018_v19, 1e-24 }
 0x2ac   : > { %v1924_v21 = vpop.eup %1923  ;;  %v1020_v22 = vpop.xlane.xlu0 %1019 }
 0x2ad   : > { %v2489_v23 = vmul.f32 %v1924_v21, %v2409_v2  ;;  %1935 = vrsqrt.f32 %v1045_v20  ;;  %v1046_v24 = vmax.f32 %v1020_v22, 1e-24 }
 0x2ae   : > { %v1030_v25 = vpop.xlane.xlu1 %1029 }
 0x2af   : > { %1937 = vrsqrt.f32 %v1046_v24  ;;  %v1051_v28 = vmax.f32 %v1030_v25, 1e-24 }
 0x2b0   : > { %v1926_v29 = vpop.eup %1925  ;;  %v1032_v30 = vpop.xlane.xlu0 %1031 }
 0x2b1   : > { %v2492_v32 = vmul.f32 %v1926_v29, %v2412_v5  ;;  %1939 = vrsqrt.f32 %v1051_v28  ;;  %v1052_v33 = vmax.f32 %v1032_v30, 1e-24 }
 0x2b2   : > { %v1928_v34 = vpop.eup %1927  ;;  %v1026_v36 = vpop.xlane.xlu1 %1025 }
 0x2b3   : > { %v2495_v37 = vmul.f32 %v1928_v34, %v2420_v13  ;;  %1941 = vrsqrt.f32 %v1052_v33  ;;  %v1049_v2 = vmax.f32 %v1026_v36, 1e-24 }
 0x2b4   : > { %v1930_v38 = vpop.eup %1929  ;;  %v1028_v39 = vpop.xlane.xlu0 %1027 }
 0x2b5   : > { %v2498_v40 = vmul.f32 %v1930_v38, %v2417_v12  ;;  %1943 = vrsqrt.f32 %v1049_v2  ;;  %v1050_v41 = vmax.f32 %v1028_v39, 1e-24 }
 0x2b6   : > { %v1932_v44 = vpop.eup %1931  ;;  %v1034_v45 = vpop.xlane.xlu1 %1033 }
 0x2b7   : > { %v2501_v5 = vmul.f32 %v1932_v44, %v2425_v18  ;;  %1945 = vrsqrt.f32 %v1050_v41  ;;  %v1053_v46 = vmax.f32 %v1034_v45, 1e-24 }
 0x2b8   : > { %v1934_v48 = vpop.eup %1933 }
 0x2b9   : > { %v2504_v13 = vmul.f32 %v1934_v48, %v2435_v27  ;;  %1947 = vrsqrt.f32 %v1053_v46 }
 0x2ba   : > { %v1936_v49 = vpop.eup %1935  ;;  %v1036_v50 = vpop.xlane.xlu0 %1035 }
 0x2bb   : > { %v1038_v51 = vpop.xlane.xlu1 %1037  ;;  %v2507_v12 = vmul.f32 %v1936_v49, %v2432_v26  ;;  %v1054_v52 = vmax.f32 %v1036_v50, 1e-24 }
 0x2bc   : > { %v1055_v53 = vmax.f32 %v1038_v51, 1e-24  ;;  %v1938_v55 = vpop.eup %1937 }
 0x2bd   : > { %v2510_v56 = vmul.f32 %v1938_v55, %v2440_v31  ;;  %1949 = vrsqrt.f32 %v1054_v52 }
 0x2be   : > { %v1940_v18 = vpop.eup %1939  ;;  %1951 = vrsqrt.f32 %v1055_v53  ;;  %v1040_v58 = vpop.xlane.xlu0 %1039 }
 0x2bf   : > { %v2513_v27 = vmul.f32 %v1940_v18, %v2445_v35  ;;  %v1056_v59 = vmax.f32 %v1040_v58, 1e-24 }
 0x2c0   : > { %v1942_v60 = vpop.eup %1941 }
 0x2c1   : > { %v2516_v0 = vmul.f32 %v1942_v60, %v2455_v43  ;;  %1953 = vrsqrt.f32 %v1056_v59 }
 0x2c2   : > { %v1944_v26 = vpop.eup %1943 }
 0x2c3   : > { %v2519_v1 = vmul.f32 %v1944_v26, %v2452_v42 }
 0x2c4   : > { %v1946_v3 = vpop.eup %1945 }
 0x2c5   : > { %v2522_v31 = vmul.f32 %v1946_v3, %v2460_v47 }
 0x2c6   : > { %v1948_v4 = vpop.eup %1947 }
 0x2c7   : > { %v2525_v6 = vmul.f32 %v1948_v4, %v2467_v54 }
 0x2ca   : > { %v1950_v35 = vpop.eup %1949 }
 0x2cb   : > { %v1952_v7 = vpop.eup %1951  ;;  %v2528_v8 = vmul.f32 %v1950_v35, %v2477_v61  ;;  %1092 = sbr.rel (%p1585_p8) target bundleno = 855 (0x357), region = 56 }
 0x2cc   : > { %v2531_v43 = vmul.f32 %v1952_v7, %v2472_v57 }
 0x2ce   : > { %v1954_v9 = vpop.eup %1953 }
 0x2cf   : > { %v2534_v42 = vmul.f32 %v1954_v9, %v2480_v63 }
 0x2d0   : > { %v1162_v47 = vmul.f32 0.0, %v2489_v23  ;;  %v1176_v54 = vadd.f32 %v2495_v37, %v2492_v32  ;;  %v1163_v62 = vmul.f32 0.0, %v2498_v40  ;;  %v1164_v61 = vmul.f32 0.0, %v2507_v12 }
 0x2d1   : > { %v1165_v57 = vmul.f32 0.0, %v2510_v56  ;;  %v1166_v14 = vmul.f32 0.0, %v2501_v5  ;;  %v1167_v15 = vmul.f32 0.0, %v2504_v13  ;;  %v1168_v17 = vmul.f32 0.0, %v2519_v1 }
 0x2d2   : > { %v1177_v10 = vadd.f32 %v1176_v54, %v1162_v47  ;;  %v1169_v20 = vmul.f32 0.0, %v2522_v31  ;;  %v1170_v22 = vmul.f32 0.0, %v2513_v27  ;;  %v1171_v25 = vmul.f32 0.0, %v2516_v0 }
 0x2d3   : > { %v1172_v29 = vmul.f32 0.0, %v2525_v6  ;;  %v1173_v33 = vmul.f32 0.0, %v2528_v8  ;;  %v1174_v36 = vmul.f32 0.0, %v2531_v43  ;;  %v1175_v38 = vmul.f32 0.0, %v2534_v42 }
 0x2d4   : > { %v1178_v11 = vadd.f32 %v1177_v10, %v1163_v62 }
 0x2d6   : > { %v1179_v63 = vadd.f32 %v1178_v11, %v1164_v61 }
 0x2d8   : > { %v1180_v16 = vadd.f32 %v1179_v63, %v1165_v57 }
 0x2da   : > { %v1181_v19 = vadd.f32 %v1180_v16, %v1166_v14 }
 0x2dc   : > { %v1182_v21 = vadd.f32 %v1181_v19, %v1167_v15 }
 0x2de   : > { %v1183_v24 = vadd.f32 %v1182_v21, %v1168_v17 }
 0x2e0   : > { %v1184_v28 = vadd.f32 %v1183_v24, %v1169_v20 }
 0x2e2   : > { %v1185_v30 = vadd.f32 %v1184_v28, %v1170_v22 }
 0x2e4   : > { %v1186_v34 = vadd.f32 %v1185_v30, %v1171_v25 }
 0x2e6   : > { %v1187_v2 = vadd.f32 %v1186_v34, %v1172_v29 }
 0x2e8   : > { %v1188_v39 = vadd.f32 %v1187_v2, %v1173_v33 }
 0x2ea   : > { %v1189_v41 = vadd.f32 %v1188_v39, %v1174_v36 }
 0x2ec   : > { %v1190_v44 = vadd.f32 %v1189_v41, %v1175_v38 }
 0x2ee   : > { %v1191_v45 = vrot.slane %v1190_v44, 4 }
 0x2f0   : > { %v1192_v46 = vadd.f32 %v1191_v45, %v1190_v44 }
 0x2f2   : > { %v1193_v48 = vrot.slane %v1192_v46, 2 }
 0x2f4   : > { %v1194_v49 = vadd.f32 %v1193_v48, %v1192_v46 }
 0x2f6   : > { %v1195_v50 = vrot.slane %v1194_v49, 1 }
 0x2f8   : > { %v1196_v51 = vadd.f32 %v1195_v50, %v1194_v49 }
 0x2fa   : > { %v1197_v52 = vmul.f32 0.0625, %v1196_v51 }
 0x2fc   : > { %v1200_v53 = vsub.f32 %v2489_v23, %v1197_v52  ;;  %v2555_v55 = vsub.f32 %v2492_v32, %v1197_v52  ;;  %v2558_v18 = vsub.f32 %v2495_v37, %v1197_v52  ;;  %v1201_v58 = vsub.f32 %v2498_v40, %v1197_v52 }
 0x2fd   : > { %v1202_v59 = vsub.f32 %v2507_v12, %v1197_v52  ;;  %v1203_v26 = vsub.f32 %v2510_v56, %v1197_v52  ;;  %v1204_v7 = vsub.f32 %v2501_v5, %v1197_v52  ;;  %v1205_v54 = vsub.f32 %v2504_v13, %v1197_v52 }
 0x2fe   : > { %v2562_v60 = vmul.f32 0.0, %v1200_v53  ;;  %v2565_v3 = vmul.f32 0.0, %v1201_v58  ;;  %v1230_v4 = vmul.f32 %v2555_v55, %v2555_v55  ;;  %v1231_v35 = vmul.f32 %v2558_v18, %v2558_v18 }
 0x2ff   : > { %v2572_v9 = vmul.f32 0.0, %v1202_v59  ;;  %v2577_v62 = vmul.f32 0.0, %v1203_v26  ;;  %v1206_v57 = vsub.f32 %v2519_v1, %v1197_v52  ;;  %v1220_v11 = vmul.f32 0.0, %v1204_v7 }
 0x300   : > { %v1232_v47 = vmul.f32 %v2562_v60, %v2562_v60  ;;  %v1233_v61 = vmul.f32 %v2565_v3, %v2565_v3  ;;  %v1246_v10 = vadd.f32 %v1231_v35, %v1230_v4  ;;  %v1207_v15 = vsub.f32 %v2522_v31, %v1197_v52 }
 0x301   : > { %v1234_v14 = vmul.f32 %v2572_v9, %v2572_v9  ;;  %v1221_v16 = vmul.f32 0.0, %v1205_v54  ;;  %v1235_v17 = vmul.f32 %v2577_v62, %v2577_v62  ;;  %v1208_v20 = vsub.f32 %v2513_v27, %v1197_v52 }
 0x302   : > { %v1247_v63 = vadd.f32 %v1246_v10, %v1232_v47  ;;  %v2588_v21 = vmul.f32 0.0, %v1206_v57  ;;  %v1236_v22 = vmul.f32 %v1220_v11, %v1220_v11  ;;  %v1209_v25 = vsub.f32 %v2516_v0, %v1197_v52 }
 0x303   : > { %v2591_v28 = vmul.f32 0.0, %v1207_v15  ;;  %v1237_v29 = vmul.f32 %v1221_v16, %v1221_v16  ;;  %v1210_v33 = vsub.f32 %v2525_v6, %v1197_v52  ;;  %v2594_v34 = vmul.f32 0.0, %v1208_v20 }
 0x304   : > { %v1248_v19 = vadd.f32 %v1247_v63, %v1233_v61  ;;  %v1238_v36 = vmul.f32 %v2588_v21, %v2588_v21  ;;  %v1211_v38 = vsub.f32 %v2528_v8, %v1197_v52  ;;  %v2599_v39 = vmul.f32 0.0, %v1209_v25 }
 0x305   : > { %v1239_v41 = vmul.f32 %v2591_v28, %v2591_v28  ;;  %v1212_v45 = vsub.f32 %v2531_v43, %v1197_v52  ;;  %v2604_v46 = vmul.f32 0.0, %v1210_v33  ;;  %v1240_v48 = vmul.f32 %v2594_v34, %v2594_v34 }
 0x306   : > { %v1249_v24 = vadd.f32 %v1248_v19, %v1234_v14  ;;  %v1213_v50 = vsub.f32 %v2534_v42, %v1197_v52  ;;  %v2609_v51 = vmul.f32 0.0, %v1211_v38  ;;  %v1241_v53 = vmul.f32 %v2599_v39, %v2599_v39 }
 0x307   : > { %v2613_v59 = vmul.f32 0.0, %v1212_v45  ;;  %v1242_v26 = vmul.f32 %v2604_v46, %v2604_v46 }
 0x308   : > { %v1250_v30 = vadd.f32 %v1249_v24, %v1235_v17  ;;  %v2617_v35 = vmul.f32 0.0, %v1213_v50  ;;  %v1243_v7 = vmul.f32 %v2609_v51, %v2609_v51 }
 0x309   : > { %v1244_v52 = vmul.f32 %v2613_v59, %v2613_v59 }
 0x30a   : > { %v1251_v2 = vadd.f32 %v1250_v30, %v1236_v22  ;;  %v1245_v61 = vmul.f32 %v2617_v35, %v2617_v35  ;;  %v2626_v30 = vld [vmem:[%s2245_s21 + $0x1] ss:$0 sm:$0xff] }
 0x30c   : > { %v1252_v44 = vadd.f32 %v1251_v2, %v1237_v29 }
 0x30e   : > { %v1253_v49 = vadd.f32 %v1252_v44, %v1238_v36 }
 0x310   : > { %v1254_v58 = vadd.f32 %v1253_v49, %v1239_v41  ;;  %v2633_v41 = vld [vmem:[%s2245_s21 + $0x2] ss:$0 sm:$0xff] }
 0x312   : > { %v1255_v4 = vadd.f32 %v1254_v58, %v1240_v48 }
 0x314   : > { %v1256_v47 = vadd.f32 %v1255_v4, %v1241_v53 }
 0x316   : > { %v1257_v54 = vadd.f32 %v1256_v47, %v1242_v26 }
 0x318   : > { %v1258_v10 = vadd.f32 %v1257_v54, %v1243_v7 }
 0x31a   : > { %v1259_v57 = vadd.f32 %v1258_v10, %v1244_v52 }
 0x31c   : > { %v1260_v14 = vadd.f32 %v1259_v57, %v1245_v61 }
 0x31e   : > { %v1261_v63 = vrot.slane %v1260_v14, 4 }
 0x320   : > { %v1262_v15 = vadd.f32 %v1261_v63, %v1260_v14 }
 0x322   : > { %v1263_v17 = vrot.slane %v1262_v15, 2 }
 0x324   : > { %v1264_v19 = vadd.f32 %v1263_v17, %v1262_v15 }
 0x326   : > { %v1265_v20 = vrot.slane %v1264_v19, 1 }
 0x328   : > { %v1266_v22 = vadd.f32 %v1265_v20, %v1264_v19 }
 0x32a   : > { %v1267_v24 = vmul.f32 0.0625, %v1266_v22 }
 0x32c   : > { %v1268_v25 = vadd.f32 1e-05, %v1267_v24 }
 0x32e   : > { %1955 = vrsqrt.f32 %v1268_v25 }
 0x33b   : > { %v1956_v29 = vpop.eup %1955 }
 0x33c   : > { %v1270_v33 = vmul.f32 %v1956_v29, %v2555_v55  ;;  %v1271_v36 = vmul.f32 %v1956_v29, %v2558_v18  ;;  %v1272_v2 = vmul.f32 %v1956_v29, %v2562_v60  ;;  %v1273_v38 = vmul.f32 %v1956_v29, %v2565_v3 }
 0x33d   : > { %v1274_v44 = vmul.f32 %v1956_v29, %v2572_v9  ;;  %v1275_v45 = vmul.f32 %v1956_v29, %v2577_v62  ;;  %v1276_v48 = vmul.f32 %v1956_v29, %v1220_v11  ;;  %v1277_v49 = vmul.f32 %v1956_v29, %v1221_v16 }
 0x33e   : > { %v1290_v50 = vmul.f32 %v2626_v30, %v1270_v33  ;;  %v1291_v53 = vmul.f32 %v2626_v30, %v1271_v36  ;;  %v1292_v55 = vmul.f32 %v2626_v30, %v1272_v2  ;;  %v1293_v18 = vmul.f32 %v2626_v30, %v1273_v38 }
 0x33f   : > { %v1294_v60 = vmul.f32 %v2626_v30, %v1274_v44  ;;  %v1295_v3 = vmul.f32 %v2626_v30, %v1275_v45  ;;  %v1296_v58 = vmul.f32 %v2626_v30, %v1276_v48  ;;  %v1297_v9 = vmul.f32 %v2626_v30, %v1277_v49 }
 0x340   : > { %v1310_v62 = vadd.f32 %v2633_v41, %v1290_v50  ;;  %v1311_v11 = vadd.f32 %v2633_v41, %v1291_v53  ;;  %v1312_v16 = vadd.f32 %v2633_v41, %v1292_v55  ;;  %v1313_v26 = vadd.f32 %v2633_v41, %v1293_v18 }
 0x341   : > { %v1314_v4 = vadd.f32 %v2633_v41, %v1294_v60  ;;  %v1315_v7 = vadd.f32 %v2633_v41, %v1295_v3  ;;  %v1316_v47 = vadd.f32 %v2633_v41, %v1296_v58  ;;  %v1317_v52 = vadd.f32 %v2633_v41, %v1297_v9 }
 0x342   : > { %v1326_v54 = vmax.f32 %v1310_v62, 0.0  ;;  %v1327_v61 = vmax.f32 %v1311_v11, 0.0  ;;  %v1328_v10 = vmax.f32 %v1312_v16, 0.0  ;;  %v1329_v57 = vmax.f32 %v1313_v26, 0.0 }
 0x343   : > { %v1330_v14 = vmax.f32 %v1314_v4, 0.0  ;;  %v1331_v63 = vmax.f32 %v1315_v7, 0.0  ;;  %v1332_v15 = vmax.f32 %v1316_v47, 0.0  ;;  %v1333_v17 = vmax.f32 %v1317_v52, 0.0 }
 0x344   : > { %v1629_v19 = vpack.c.bf16 %v1327_v61, %v1326_v54  ;;  %v1344_v20 = vmul.f32 0.0, %v1328_v10  ;;  %v1345_v22 = vmul.f32 0.0, %v1329_v57  ;;  %v1278_v24 = vmul.f32 %v1956_v29, %v2588_v21 }
 0x345   : > { %v1346_v25 = vmul.f32 0.0, %v1330_v14  ;;  %v1347_v33 = vmul.f32 0.0, %v1331_v63  ;;  %v1348_v36 = vmul.f32 0.0, %v1332_v15  ;;  %v1349_v2 = vmul.f32 0.0, %v1333_v17 }
 0x346   : > { %1630 = vst [vmem:[#allocation2] sm:$0xff] %v1629_v19   ;;  %v1634_v38 = vpack.c.bf16 %v1345_v22, %v1344_v20  ;;  %v1279_v44 = vmul.f32 %v1956_v29, %v2591_v28  ;;  %v1298_v45 = vmul.f32 %v2626_v30, %v1278_v24  ;;  %v1280_v48 = vmul.f32 %v1956_v29, %v2594_v34 }
 0x347   : > { %v1639_v49 = vpack.c.bf16 %v1347_v33, %v1346_v25  ;;  %v1644_v50 = vpack.c.bf16 %v1349_v2, %v1348_v36  ;;  %v1281_v53 = vmul.f32 %v1956_v29, %v2599_v39  ;;  %v1282_v55 = vmul.f32 %v1956_v29, %v2604_v46 }
 0x348   : > { %1666 = vst [vmem:[#allocation2 + $0x8] sm:$0xff] %v1634_v38   ;;  %v1299_v21 = vmul.f32 %v2626_v30, %v1279_v44  ;;  %v1318_v18 = vadd.f32 %v2633_v41, %v1298_v45  ;;  %v1300_v60 = vmul.f32 %v2626_v30, %v1280_v48  ;;  %v1283_v3 = vmul.f32 %v1956_v29, %v2609_v51 }
 0x349   : > { %1667 = vst [vmem:[#allocation2 + $0x10] sm:$0xff] %v1639_v49   ;;  %1668 = vst [vmem:[#allocation2 + $0x18] sm:$0xff] %v1644_v50   ;;  %v1301_v28 = vmul.f32 %v2626_v30, %v1281_v53  ;;  %v1302_v34 = vmul.f32 %v2626_v30, %v1282_v55  ;;  %v1284_v58 = vmul.f32 %v1956_v29, %v2613_v59 }
 0x34a   : > { %v1285_v39 = vmul.f32 %v1956_v29, %v2617_v35  ;;  %v1319_v46 = vadd.f32 %v2633_v41, %v1299_v21  ;;  %v1334_v9 = vmax.f32 %v1318_v18, 0.0  ;;  %v1320_v62 = vadd.f32 %v2633_v41, %v1300_v60 }
 0x34b   : > { %v1303_v11 = vmul.f32 %v2626_v30, %v1283_v3  ;;  %v1321_v16 = vadd.f32 %v2633_v41, %v1301_v28  ;;  %v1322_v51 = vadd.f32 %v2633_v41, %v1302_v34  ;;  %v1304_v26 = vmul.f32 %v2626_v30, %v1284_v58 }
 0x34c   : > { %v1305_v4 = vmul.f32 %v2626_v30, %v1285_v39  ;;  %v1335_v7 = vmax.f32 %v1319_v46, 0.0  ;;  %v1350_v47 = vmul.f32 0.0, %v1334_v9  ;;  %v1336_v59 = vmax.f32 %v1320_v62, 0.0 }
 0x34d   : > { %v1323_v35 = vadd.f32 %v2633_v41, %v1303_v11  ;;  %v1337_v29 = vmax.f32 %v1321_v16, 0.0  ;;  %v1338_v52 = vmax.f32 %v1322_v51, 0.0  ;;  %v1324_v54 = vadd.f32 %v2633_v41, %v1304_v26 }
 0x34e   : > { %v1325_v61 = vadd.f32 %v2633_v41, %v1305_v4  ;;  %v1351_v10 = vmul.f32 0.0, %v1335_v7  ;;  %v1352_v57 = vmul.f32 0.0, %v1336_v59 }
 0x34f   : > { %v1339_v14 = vmax.f32 %v1323_v35, 0.0  ;;  %v1353_v63 = vmul.f32 0.0, %v1337_v29  ;;  %v1354_v15 = vmul.f32 0.0, %v1338_v52  ;;  %v1340_v17 = vmax.f32 %v1324_v54, 0.0 }
 0x350   : > { %v1341_v19 = vmax.f32 %v1325_v61, 0.0  ;;  %v1649_v20 = vpack.c.bf16 %v1351_v10, %v1350_v47 }
 0x351   : > { %v1355_v30 = vmul.f32 0.0, %v1339_v14  ;;  %v1654_v22 = vpack.c.bf16 %v1353_v63, %v1352_v57  ;;  %v1356_v24 = vmul.f32 0.0, %v1340_v17 }
 0x352   : > { %v1357_v25 = vmul.f32 0.0, %v1341_v19  ;;  %1669 = vst [vmem:[#allocation2 + $0x20] sm:$0xff] %v1649_v20  }
 0x353   : > { %v1659_v33 = vpack.c.bf16 %v1355_v30, %v1354_v15  ;;  %1670 = vst [vmem:[#allocation2 + $0x28] sm:$0xff] %v1654_v22  }
 0x354   : > { %v1664_v36 = vpack.c.bf16 %v1357_v25, %v1356_v24 }
 0x355   : > { %1671 = vst [vmem:[#allocation2 + $0x30] sm:$0xff] %v1659_v33  }
 0x356   : > { %1672 = vst [vmem:[#allocation2 + $0x38] sm:$0xff] %v1664_v36  }
 0x357 PF: > { %p1604_p1 = scmp.ne.s32.totalorder %s2138_s22, 2 }
 0x359   : > { %1441 = sbr.rel (%p1604_p1) target bundleno = 870 (0x366), region = 60 }
 0x35e   : > { %1442 = vst [vmem:[#allocation8] sm:$0xff] %v2492_v32  ;;  %1443 = vst [vmem:[#allocation8 + $0x8] sm:$0xff] %v2495_v37 }
 0x35f   : > { %1444 = vst [vmem:[#allocation8 + $0x10] sm:$0xff] %v2489_v23  ;;  %1445 = vst [vmem:[#allocation8 + $0x18] sm:$0xff] %v2498_v40 }
 0x360   : > { %1446 = vst [vmem:[#allocation8 + $0x20] sm:$0xff] %v2507_v12  ;;  %1447 = vst [vmem:[#allocation8 + $0x28] sm:$0xff] %v2510_v56 }
 0x361   : > { %1448 = vst [vmem:[#allocation8 + $0x30] sm:$0xff] %v2501_v5  ;;  %1449 = vst [vmem:[#allocation8 + $0x38] sm:$0xff] %v2504_v13 }
 0x362   : > { %1450 = vst [vmem:[#allocation8 + $0x40] sm:$0xff] %v2519_v1  ;;  %1451 = vst [vmem:[#allocation8 + $0x48] sm:$0xff] %v2522_v31 }
 0x363   : > { %1452 = vst [vmem:[#allocation8 + $0x50] sm:$0xff] %v2513_v27  ;;  %1453 = vst [vmem:[#allocation8 + $0x58] sm:$0xff] %v2516_v0 }
 0x364   : > { %1454 = vst [vmem:[#allocation8 + $0x60] sm:$0xff] %v2525_v6  ;;  %1455 = vst [vmem:[#allocation8 + $0x68] sm:$0xff] %v2528_v8 }
 0x365   : > { %1456 = vst [vmem:[#allocation8 + $0x70] sm:$0xff] %v2531_v43  ;;  %1457 = vst [vmem:[#allocation8 + $0x78] sm:$0xff] %v2534_v42 }
 0x366 PF: > { %p1849_p5 = scmp.eq.s32.totalorder %s2138_s22, 2  ;;  %s2086_s18 = smov [#allocation8]  }
 0x367   : > { %s1464_s21 = sshll.u32 %s2086_s18, 4  ;;  %s1465_s21 = int_to_ptr.vmem [resolvable:$true] %s1464_s21 }
 0x368   : > { %s2013_s28 = scalar_lea.vmem %s1465_s21, 2048  ;;  %p2020_p0 = scmp.lt.s32.totalorder %s1465_s21, %s1465_s21 }
 0x369   : > { %p2014_p6 = scmp.ne.s32.totalorder %s1465_s21, %s2013_s28  ;;  %p2021_p13 = scmp.lt.s32.totalorder %s2013_s28, %s2013_s28 }
 0x36b   : > { %p2015_p10 = pnand %p2014_p6, %p1849_p5  ;;  %p2022_p9 = por %p2021_p13, %p2020_p0 }
 0x36d   : > { %p2016_p12 = pneg %p2015_p10 }
 0x36f   : > { %p2023_p2 = pnand %p2022_p9, %p2016_p12 }
 0x371   : > { %2026 = shalt.err (!%p2023_p2)
}
 0x372   : > { %s2087_s7 = smov 128   ;;  %s2088_s9 = smov 8  }
 0x373   : > { %1838 = dma.vmem_to_hbm [thread:$0]  (%p1849_p5), %s1465_s21, 2048, %s2724_s5, [#allocation5], %s2087_s7, %s2087_s7, %s2088_s9  }
 0x374   : > { %2062 = dma.done.wait (%p1849_p5), [#allocation5], 2048  }
 0x375   : > { %2064 = vsyncadd (%p1849_p5), [#allocation5], 4294965248 }
 0x376 PF: > { %p19_p3 = scmp.ge.s32.totalorder %s2141_s23, 5   ;;  %s2732_s18 = smov %s2071_s19 }
 0x377   : > { %s2733_s19 = smov %s2075_s20  ;;  %s2734_s20 = smov %s2151_s26 }
 0x378   : > { %s2735_s21 = smov %s2141_s23  ;;  %21 = sbr.rel (!%p19_p3) target bundleno = 6 (0x6), region = 102 }
 0x37d   :  { %1480 = vsyncpa [#allocation4], 1 }
 0x37e   :  { %1482 = vsyncpa [#allocation4 + $0x1], 1 }
 0x37f   :  { %1483 = vsyncpa [#allocation7], 1 }
 0x380   :  { %1485 = vsyncpa [#allocation7 + $0x1], 1 }
 0x381   :  { %1486 = vsyncpa [#allocation5], 1 }
 0x382   :  { %1488 = vsyncpa [#allocation5 + $0x1], 1 }

</bundles_post_ra>
